<compile_context>
chip_gen: v7x
topology: tpu7x:2x2x1
jax: 0.10.0
libtpu: 0.0.40
codegen_flags: <defaults>
</compile_context>

<pallas_src>
import jax
import jax.numpy as jnp
from jax.experimental import pallas as pl
from jax.experimental.pallas import tpu as pltpu

LANE = 128


def _round_up(x, m):
    return (x + m - 1) // m * m


def decoder2_kernel(z_ref,
                    w1_ref, b1_ref,
                    w2_ref, b2_ref,
                    w3_ref, b3_ref,
                    w4_ref, b4_ref,
                    o_ref):
    # Whole network per batch tile. All weights use constant block indices, so
    # they are fetched once and stay resident in VMEM across grid steps.
    h = jnp.dot(z_ref[...], w1_ref[...], preferred_element_type=jnp.float32)
    h = jnp.maximum(h + b1_ref[...], 0.0).astype(jnp.bfloat16)
    h = jnp.dot(h, w2_ref[...], preferred_element_type=jnp.float32)
    h = jnp.maximum(h + b2_ref[...], 0.0).astype(jnp.bfloat16)
    h = jnp.dot(h, w3_ref[...], preferred_element_type=jnp.float32)
    h = jnp.maximum(h + b3_ref[...], 0.0).astype(jnp.bfloat16)
    y = jnp.dot(h, w4_ref[...], preferred_element_type=jnp.float32) + b4_ref[...]
    # Sigmoid via EUP exp + approx reciprocal; clamp guards exp overflow (inf).
    y = jnp.maximum(y, -30.0)
    o_ref[...] = pl.reciprocal(1.0 + jnp.exp(-y), approx=True).astype(o_ref.dtype)


def prepare_decoder2_params(params):
    """One-time weight preparation, hoisted out of the forward hot path:
    pad layer-4 to a lane-dense width (784 -> 896 = 7*128), cast matmul
    weights to bf16 and biases to f32."""
    (w1, b1), (w2, b2), (w3, b3), (w4, b4) = params
    n_out = w4.shape[1]
    n_out_p = _round_up(n_out, LANE)
    w4p = jnp.pad(w4, ((0, 0), (0, n_out_p - n_out)))
    b4p = jnp.pad(b4, ((0, 0), (0, n_out_p - n_out)))
    bf16 = lambda a: a.astype(jnp.bfloat16)
    f32 = lambda a: a.astype(jnp.float32)
    return (bf16(w1), f32(b1), bf16(w2), f32(b2), bf16(w3), f32(b3),
            bf16(w4p), f32(b4p), n_out)


def decoder2_forward(z, prepared, *, batch_tile=256, out_dtype=jnp.bfloat16):
    """Fused 4-layer MLP decoder: (Linear+ReLU) x3, Linear+Sigmoid."""
    w1, b1, w2, b2, w3, b3, w4, b4, n_out = prepared
    B, n_embedd = z.shape
    d1, d2, d3 = w1.shape[1], w2.shape[1], w3.shape[1]
    n_out_p = w4.shape[1]

    # Batch tile: large tiles (256) keep the 256-row MXU on v6e/v7x full; for
    # mid-sized batches split into >=2 tiles so the parallel grid axis spans
    # both v7x TensorCores; tiny batches use a single sublane-aligned tile.
    if B > batch_tile:
        tb = batch_tile
    elif B > 8:
        tb = _round_up((B + 1) // 2, 8)
    else:
        tb = _round_up(max(B, 1), 8)
    Bp = _round_up(B, tb)
    zp = jnp.pad(z, ((0, Bp - B), (0, 0))).astype(jnp.bfloat16)

    const = lambda shape: pl.BlockSpec(shape, lambda i: (0, 0))

    out = pl.pallas_call(
        decoder2_kernel,
        out_shape=jax.ShapeDtypeStruct((Bp, n_out_p), jnp.bfloat16),
        grid=(Bp // tb,),
        in_specs=[
            pl.BlockSpec((tb, n_embedd), lambda i: (i, 0)),   # z batch tile
            const((n_embedd, d1)), const((1, d1)),            # w1, b1
            const((d1, d2)), const((1, d2)),                  # w2, b2
            const((d2, d3)), const((1, d3)),                  # w3, b3
            const((d3, n_out_p)), const((1, n_out_p)),        # w4, b4 (full width)
        ],
        out_specs=pl.BlockSpec((tb, n_out_p), lambda i: (i, 0)),
        compiler_params=pltpu.CompilerParams(
            dimension_semantics=("parallel",),
        ),
    )(zp, w1, b1, w2, b2, w3, b3, w4, b4)

    out = out[:B, :n_out]
    return out if out_dtype == jnp.bfloat16 else out.astype(out_dtype)


def init_linear(key, fan_in, fan_out):
    """Deterministic PyTorch-style uniform(-1/sqrt(fan_in), 1/sqrt(fan_in)) init.
    Weight stored as [in, out]; bias as [1, out]."""
    kw, kb = jax.random.split(key)
    bound = 1.0 / jnp.sqrt(fan_in)
    w = jax.random.uniform(kw, (fan_in, fan_out), jnp.float32, -bound, bound)
    b = jax.random.uniform(kb, (1, fan_out), jnp.float32, -bound, bound)
    return w, b


def reference_forward(z, params):
    """Pure-JAX reference using the same bf16-weight / f32-accumulation recipe."""
    h = z.astype(jnp.float32)
    for i, (w, b) in enumerate(params):
        h = jnp.dot(h.astype(jnp.bfloat16), w.astype(jnp.bfloat16),
                    preferred_element_type=jnp.float32) + b.astype(jnp.float32)
        if i < 3:
            h = jnp.maximum(h, 0.0)
        else:
            h = jax.nn.sigmoid(h)
    return h


if __name__ == "__main__":
    n_embedd = 32   # decoder input embedding size (n_hidden unused by forward)
    batch = 8

    key = jax.random.PRNGKey(0)
    k_z, k1, k2, k3, k4 = jax.random.split(key, 5)

    dims = [(n_embedd, 128), (128, 256), (256, 512), (512, 28 * 28)]
    params = [init_linear(k, fi, fo) for k, (fi, fo) in zip([k1, k2, k3, k4], dims)]

    z = jax.random.normal(k_z, (batch, n_embedd), jnp.float32)

    prepared = prepare_decoder2_params(params)   # one-time pad + cast, off hot path
    out = decoder2_forward(z, prepared)
    out = jax.block_until_ready(out)

    # sanity check against pure-JAX reference (same bf16 matmul recipe;
    # tolerance covers bf16 output quantization, accumulation order and the
    # approx-reciprocal sigmoid)
    ref = reference_forward(z, params)
    assert out.shape == (batch, 28 * 28)
    assert out.dtype == jnp.bfloat16
    assert jnp.allclose(out.astype(jnp.float32), ref, atol=1e-2, rtol=1e-2), \
        "mismatch vs reference"

    print("KERNEL_OK")
</pallas_src>

<mosaic_0001>
module attributes {stable_mosaic.version = 11 : i64} {
  func.func @decoder2_kernel(%arg0: i32, %arg1: memref<8x32xbf16, #tpu.memory_space<vmem>>, %arg2: memref<32x128xbf16, #tpu.memory_space<vmem>>, %arg3: memref<1x128xf32, #tpu.memory_space<vmem>>, %arg4: memref<128x256xbf16, #tpu.memory_space<vmem>>, %arg5: memref<1x256xf32, #tpu.memory_space<vmem>>, %arg6: memref<256x512xbf16, #tpu.memory_space<vmem>>, %arg7: memref<1x512xf32, #tpu.memory_space<vmem>>, %arg8: memref<512x896xbf16, #tpu.memory_space<vmem>>, %arg9: memref<1x896xf32, #tpu.memory_space<vmem>>, %arg10: memref<8x896xbf16, #tpu.memory_space<vmem>>) attributes {dimension_semantics = [#tpu.dimension_semantics<parallel>], iteration_bounds = array<i64: 1>, scalar_prefetch = 0 : i64, scratch_operands = 0 : i64, tpu.core_type = #tpu.core_type<tc>, window_params = [{transform_indices = @transform_0, window_bounds = array<i64: 8, 32>}, {pipeline_mode = #tpu.pipeline_mode<synchronous>, transform_indices = @transform_1, window_bounds = array<i64: 32, 128>}, {pipeline_mode = #tpu.pipeline_mode<synchronous>, transform_indices = @transform_2, window_bounds = array<i64: 1, 128>}, {pipeline_mode = #tpu.pipeline_mode<synchronous>, transform_indices = @transform_3, window_bounds = array<i64: 128, 256>}, {pipeline_mode = #tpu.pipeline_mode<synchronous>, transform_indices = @transform_4, window_bounds = array<i64: 1, 256>}, {pipeline_mode = #tpu.pipeline_mode<synchronous>, transform_indices = @transform_5, window_bounds = array<i64: 256, 512>}, {pipeline_mode = #tpu.pipeline_mode<synchronous>, transform_indices = @transform_6, window_bounds = array<i64: 1, 512>}, {pipeline_mode = #tpu.pipeline_mode<synchronous>, transform_indices = @transform_7, window_bounds = array<i64: 512, 896>}, {pipeline_mode = #tpu.pipeline_mode<synchronous>, transform_indices = @transform_8, window_bounds = array<i64: 1, 896>}, {transform_indices = @transform_9, window_bounds = array<i64: 8, 896>}]} {
    %c0 = arith.constant 0 : index
    %c0_0 = arith.constant 0 : index
    %0 = vector.load %arg1[%c0, %c0_0] : memref<8x32xbf16, #tpu.memory_space<vmem>>, vector<8x32xbf16>
    %c0_1 = arith.constant 0 : index
    %c0_2 = arith.constant 0 : index
    %1 = vector.load %arg2[%c0_1, %c0_2] : memref<32x128xbf16, #tpu.memory_space<vmem>>, vector<32x128xbf16>
    %cst = arith.constant dense<0.000000e+00> : vector<8x128xf32>
    %2 = tpu.matmul %0, %1, %cst {dimension_numbers = #tpu.dot_dimension_numbers<[1], [0], [0], [1], [0, 0, 1, 1], [], []>} : vector<8x32xbf16>, vector<32x128xbf16>, vector<8x128xf32> -> vector<8x128xf32>
    %c0_3 = arith.constant 0 : index
    %c0_4 = arith.constant 0 : index
    %3 = vector.load %arg3[%c0_3, %c0_4] : memref<1x128xf32, #tpu.memory_space<vmem>>, vector<1x128xf32>
    %4 = vector.broadcast %3 : vector<1x128xf32> to vector<8x128xf32>
    %5 = arith.addf %2, %4 : vector<8x128xf32>
    %cst_5 = arith.constant 0.000000e+00 : f32
    %6 = vector.broadcast %cst_5 : f32 to vector<8x128xf32>
    %7 = arith.maximumf %5, %6 : vector<8x128xf32>
    %8 = arith.truncf %7 : vector<8x128xf32> to vector<8x128xbf16>
    %c0_6 = arith.constant 0 : index
    %c0_7 = arith.constant 0 : index
    %9 = vector.load %arg4[%c0_6, %c0_7] : memref<128x256xbf16, #tpu.memory_space<vmem>>, vector<128x256xbf16>
    %cst_8 = arith.constant dense<0.000000e+00> : vector<8x256xf32>
    %10 = tpu.matmul %8, %9, %cst_8 {dimension_numbers = #tpu.dot_dimension_numbers<[1], [0], [0], [1], [0, 0, 1, 1], [], []>} : vector<8x128xbf16>, vector<128x256xbf16>, vector<8x256xf32> -> vector<8x256xf32>
    %c0_9 = arith.constant 0 : index
    %c0_10 = arith.constant 0 : index
    %11 = vector.load %arg5[%c0_9, %c0_10] : memref<1x256xf32, #tpu.memory_space<vmem>>, vector<1x256xf32>
    %12 = vector.broadcast %11 : vector<1x256xf32> to vector<8x256xf32>
    %13 = arith.addf %10, %12 : vector<8x256xf32>
    %cst_11 = arith.constant 0.000000e+00 : f32
    %14 = vector.broadcast %cst_11 : f32 to vector<8x256xf32>
    %15 = arith.maximumf %13, %14 : vector<8x256xf32>
    %16 = arith.truncf %15 : vector<8x256xf32> to vector<8x256xbf16>
    %c0_12 = arith.constant 0 : index
    %c0_13 = arith.constant 0 : index
    %17 = vector.load %arg6[%c0_12, %c0_13] : memref<256x512xbf16, #tpu.memory_space<vmem>>, vector<256x512xbf16>
    %cst_14 = arith.constant dense<0.000000e+00> : vector<8x512xf32>
    %18 = tpu.matmul %16, %17, %cst_14 {dimension_numbers = #tpu.dot_dimension_numbers<[1], [0], [0], [1], [0, 0, 1, 1], [], []>} : vector<8x256xbf16>, vector<256x512xbf16>, vector<8x512xf32> -> vector<8x512xf32>
    %c0_15 = arith.constant 0 : index
    %c0_16 = arith.constant 0 : index
    %19 = vector.load %arg7[%c0_15, %c0_16] : memref<1x512xf32, #tpu.memory_space<vmem>>, vector<1x512xf32>
    %20 = vector.broadcast %19 : vector<1x512xf32> to vector<8x512xf32>
    %21 = arith.addf %18, %20 : vector<8x512xf32>
    %cst_17 = arith.constant 0.000000e+00 : f32
    %22 = vector.broadcast %cst_17 : f32 to vector<8x512xf32>
    %23 = arith.maximumf %21, %22 : vector<8x512xf32>
    %24 = arith.truncf %23 : vector<8x512xf32> to vector<8x512xbf16>
    %c0_18 = arith.constant 0 : index
    %c0_19 = arith.constant 0 : index
    %25 = vector.load %arg8[%c0_18, %c0_19] : memref<512x896xbf16, #tpu.memory_space<vmem>>, vector<512x896xbf16>
    %cst_20 = arith.constant dense<0.000000e+00> : vector<8x896xf32>
    %26 = tpu.matmul %24, %25, %cst_20 {dimension_numbers = #tpu.dot_dimension_numbers<[1], [0], [0], [1], [0, 0, 1, 1], [], []>} : vector<8x512xbf16>, vector<512x896xbf16>, vector<8x896xf32> -> vector<8x896xf32>
    %c0_21 = arith.constant 0 : index
    %c0_22 = arith.constant 0 : index
    %27 = vector.load %arg9[%c0_21, %c0_22] : memref<1x896xf32, #tpu.memory_space<vmem>>, vector<1x896xf32>
    %28 = vector.broadcast %27 : vector<1x896xf32> to vector<8x896xf32>
    %29 = arith.addf %26, %28 : vector<8x896xf32>
    %cst_23 = arith.constant -3.000000e+01 : f32
    %30 = vector.broadcast %cst_23 : f32 to vector<8x896xf32>
    %31 = arith.maximumf %29, %30 : vector<8x896xf32>
    %cst_24 = arith.constant 0.000000e+00 : f32
    %32 = vector.broadcast %cst_24 : f32 to vector<8x896xf32>
    %33 = arith.subf %32, %31 : vector<8x896xf32>
    %34 = math.exp %33 : vector<8x896xf32>
    %cst_25 = arith.constant 1.000000e+00 : f32
    %35 = vector.broadcast %cst_25 : f32 to vector<8x896xf32>
    %36 = arith.addf %35, %34 : vector<8x896xf32>
    %37 = tpu.reciprocal %36 {approx = true} : vector<8x896xf32> -> vector<8x896xf32>
    %38 = arith.truncf %37 : vector<8x896xf32> to vector<8x896xbf16>
    %c0_26 = arith.constant 0 : index
    %c0_27 = arith.constant 0 : index
    %39 = vector.load %arg10[%c0_26, %c0_27] : memref<8x896xbf16, #tpu.memory_space<vmem>>, vector<8x896xbf16>
    tpu.vector_store %arg10[%c0_26, %c0_27], %38 {strides = array<i32>} : memref<8x896xbf16, #tpu.memory_space<vmem>>, vector<8x896xbf16>,
    return
  }
  func.func @transform_0(%arg0: i32) -> (i32, i32) {
    %c0_i32 = arith.constant 0 : i32
    %c0_i32_0 = arith.constant 0 : i32
    return %arg0, %c0_i32 : i32, i32
  }
  func.func @transform_1(%arg0: i32) -> (i32, i32) {
    %c0_i32 = arith.constant 0 : i32
    %c0_i32_0 = arith.constant 0 : i32
    %c0_i32_1 = arith.constant 0 : i32
    return %c0_i32, %c0_i32_0 : i32, i32
  }
  func.func @transform_2(%arg0: i32) -> (i32, i32) {
    %c0_i32 = arith.constant 0 : i32
    %c0_i32_0 = arith.constant 0 : i32
    %c0_i32_1 = arith.constant 0 : i32
    return %c0_i32, %c0_i32_0 : i32, i32
  }
  func.func @transform_3(%arg0: i32) -> (i32, i32) {
    %c0_i32 = arith.constant 0 : i32
    %c0_i32_0 = arith.constant 0 : i32
    %c0_i32_1 = arith.constant 0 : i32
    return %c0_i32, %c0_i32_0 : i32, i32
  }
  func.func @transform_4(%arg0: i32) -> (i32, i32) {
    %c0_i32 = arith.constant 0 : i32
    %c0_i32_0 = arith.constant 0 : i32
    %c0_i32_1 = arith.constant 0 : i32
    return %c0_i32, %c0_i32_0 : i32, i32
  }
  func.func @transform_5(%arg0: i32) -> (i32, i32) {
    %c0_i32 = arith.constant 0 : i32
    %c0_i32_0 = arith.constant 0 : i32
    %c0_i32_1 = arith.constant 0 : i32
    return %c0_i32, %c0_i32_0 : i32, i32
  }
  func.func @transform_6(%arg0: i32) -> (i32, i32) {
    %c0_i32 = arith.constant 0 : i32
    %c0_i32_0 = arith.constant 0 : i32
    %c0_i32_1 = arith.constant 0 : i32
    return %c0_i32, %c0_i32_0 : i32, i32
  }
  func.func @transform_7(%arg0: i32) -> (i32, i32) {
    %c0_i32 = arith.constant 0 : i32
    %c0_i32_0 = arith.constant 0 : i32
    %c0_i32_1 = arith.constant 0 : i32
    return %c0_i32, %c0_i32_0 : i32, i32
  }
  func.func @transform_8(%arg0: i32) -> (i32, i32) {
    %c0_i32 = arith.constant 0 : i32
    %c0_i32_0 = arith.constant 0 : i32
    %c0_i32_1 = arith.constant 0 : i32
    return %c0_i32, %c0_i32_0 : i32, i32
  }
  func.func @transform_9(%arg0: i32) -> (i32, i32) {
    %c0_i32 = arith.constant 0 : i32
    %c0_i32_0 = arith.constant 0 : i32
    return %arg0, %c0_i32 : i32, i32
  }
}

</mosaic_0001>

<bundles_post_ra>
// kernel: tpu_custom_call.1
= control target key start
LH: loop header
LB: loop body
LE: loop exit
PB: predicated region body
PF: predicated region fallthrough
CT: control target
= control target key end

     0   :  { %14 = vsyncpa [#allocation3], 0  ;;  %s3925_s0 = inlined_call_operand.hbm [shape: bf16[8,32], index: 0, kind: input, shape index: {}]   ;;  %s3926_s1 = inlined_call_operand.hbm [shape: bf16[32,128], index: 1, kind: input, shape index: {}]   ;;  %s3927_s2 = inlined_call_operand.vmem [shape: f32[1,128], index: 2, kind: input, shape index: {}]   ;;  %s3928_s3 = inlined_call_operand.hbm [shape: bf16[128,256], index: 3, kind: input, shape index: {}]   ;;  %s3929_s4 = inlined_call_operand.vmem [shape: f32[1,256], index: 4, kind: input, shape index: {}]   ;;  %s3930_s5 = inlined_call_operand.hbm [shape: bf16[256,512], index: 5, kind: input, shape index: {}]   ;;  %s3931_s6 = inlined_call_operand.vmem [shape: f32[1,512], index: 6, kind: input, shape index: {}]   ;;  %s3932_s7 = inlined_call_operand.hbm [shape: bf16[512,896], index: 7, kind: input, shape index: {}]   ;;  %s3933_s8 = inlined_call_operand.vmem [shape: f32[1,896], index: 8, kind: input, shape index: {}]   ;;  %s3934_s9 = inlined_call_operand.hbm [shape: bf16[8,896], index: 9, kind: output, shape index: {}]  }
   0x1   :  { %15 = vsyncpa [#allocation6], 0 }
   0x2   :  { %16 = vsyncpa [#allocation9], 0 }
   0x3   :  { %17 = vsyncpa [#allocation4], 0  ;;  %s3698_s30 = smov [#allocation5]   ;;  %s3558_s13 = scalar_lea.hbm %s3926_s1, 256 }
   0x4   :  { %s33_s10 = sshll.u32 %s3698_s30, 4  ;;  %p3559_p0 = scmp.ne.s32.totalorder %s3926_s1, %s3558_s13  ;;  %s34_s10 = int_to_ptr.vmem [resolvable:$true] %s33_s10 }
   0x5   :  { %p3562_p1 = scmp.lt.u32.totalorder %s3558_s13, %s3926_s1 }
   0x7   :  { %p3564_p2 = pnand %p3562_p1, %p3559_p0 }
   0x9   :  { %3567 = shalt.err (!%p3564_p2)
}
   0xa   :  { %s3568_s18 = scalar_lea.vmem %s34_s10, 256  ;;  %p3573_p4 = scmp.lt.s32.totalorder %s34_s10, %s34_s10 }
   0xb   :  { %p3569_p3 = scmp.ne.s32.totalorder %s34_s10, %s3568_s18  ;;  %p3574_p5 = scmp.lt.s32.totalorder %s3568_s18, %s3568_s18 }
   0xd   :  { %p3575_p6 = por %p3574_p5, %p3573_p4 }
   0xf   :  { %p3576_p7 = pnand %p3575_p6, %p3569_p3 }
  0x11   :  { %3579 = shalt.err (!%p3576_p7)
}
  0x12   :  { %s3699_s19 = smov 64   ;;  %s3700_s20 = smov 4  }
  0x13   :  { %39 = dma.hbm_to_vmem [thread:$0]  %s3926_s1, 256, %s34_s10, [#allocation6], %s3699_s19, %s3699_s19, %s3700_s20  }
  0x14   :  { %s3701_s23 = smov [#allocation8]   ;;  %s3580_s27 = scalar_lea.hbm %s3930_s5, 8192 }
  0x15   :  { %s61_s24 = sshll.u32 %s3701_s23, 4  ;;  %p3581_p8 = scmp.ne.s32.totalorder %s3930_s5, %s3580_s27  ;;  %s62_s24 = int_to_ptr.vmem [resolvable:$true] %s61_s24 }
  0x16   :  { %p3584_p9 = scmp.lt.u32.totalorder %s3580_s27, %s3930_s5 }
  0x18   :  { %p3586_p10 = pnand %p3584_p9, %p3581_p8 }
  0x1a   :  { %3589 = shalt.err (!%p3586_p10)
}
  0x1b   :  { %s3590_s12 = scalar_lea.vmem %s62_s24, 8192  ;;  %p3595_p12 = scmp.lt.s32.totalorder %s62_s24, %s62_s24 }
  0x1c   :  { %p3591_p11 = scmp.ne.s32.totalorder %s62_s24, %s3590_s12  ;;  %p3596_p13 = scmp.lt.s32.totalorder %s3590_s12, %s3590_s12 }
  0x1e   :  { %p3597_p0 = por %p3596_p13, %p3595_p12 }
  0x20   :  { %p3598_p1 = pnand %p3597_p0, %p3591_p11 }
  0x22   :  { %3601 = shalt.err (!%p3598_p1)
}
  0x23   :  { %s3702_s1 = smov 256   ;;  %s3703_s10 = smov 16  }
  0x24   :  { %67 = dma.hbm_to_vmem [thread:$0]  %s3930_s5, 8192, %s62_s24, [#allocation9], %s3702_s1, %s3702_s1, %s3703_s10  }
  0x25   :  { %s3704_s15 = smov [#allocation2]   ;;  %s3705_s17 = smov [#allocation7]  }
  0x26   :  { %s24_s16 = sshll.u32 %s3704_s15, 4  ;;  %s47_s18 = sshll.u32 %s3705_s17, 4  ;;  %s25_s16 = int_to_ptr.vmem [resolvable:$true] %s24_s16  ;;  %s3789_s18 = int_to_ptr.vmem [resolvable:$true] %s47_s18 }
  0x27   :  { %s3602_s21 = scalar_lea.hbm %s3925_s0, 64 }
  0x28   :  { %p3603_p2 = scmp.ne.s32.totalorder %s3925_s0, %s3602_s21  ;;  %p3606_p3 = scmp.lt.u32.totalorder %s3602_s21, %s3925_s0 }
  0x2a   :  { %p3608_p4 = pnand %p3606_p3, %p3603_p2 }
  0x2c   :  { %3611 = shalt.err (!%p3608_p4)
}
  0x2d   :  { %s3612_s5 = scalar_lea.vmem %s25_s16, 64  ;;  %p3617_p6 = scmp.lt.s32.totalorder %s25_s16, %s25_s16 }
  0x2e   :  { %p3613_p5 = scmp.ne.s32.totalorder %s25_s16, %s3612_s5  ;;  %p3618_p7 = scmp.lt.s32.totalorder %s3612_s5, %s3612_s5 }
  0x30   :  { %p3619_p8 = por %p3618_p7, %p3617_p6 }
  0x32   :  { %p3620_p9 = pnand %p3619_p8, %p3613_p5 }
  0x34   :  { %3623 = shalt.err (!%p3620_p9)
}
  0x35   :  { %27 = dma.hbm_to_vmem [thread:$0]  %s3925_s0, 64, %s25_s16, [#allocation3]  }
  0x36   :  { %s3624_s30 = scalar_lea.hbm %s3928_s3, 2048 }
  0x37   :  { %p3625_p10 = scmp.ne.s32.totalorder %s3928_s3, %s3624_s30  ;;  %p3628_p11 = scmp.lt.u32.totalorder %s3624_s30, %s3928_s3 }
  0x39   :  { %p3630_p12 = pnand %p3628_p11, %p3625_p10 }
  0x3b   :  { %3633 = shalt.err (!%p3630_p12)
}
  0x3c   :  { %s3634_s13 = scalar_lea.vmem %s3789_s18, 2048  ;;  %p3639_p0 = scmp.lt.s32.totalorder %s3789_s18, %s3789_s18 }
  0x3d   :  { %p3635_p13 = scmp.ne.s32.totalorder %s3789_s18, %s3634_s13  ;;  %p3640_p1 = scmp.lt.s32.totalorder %s3634_s13, %s3634_s13 }
  0x3f   :  { %p3641_p2 = por %p3640_p1, %p3639_p0 }
  0x41   :  { %p3642_p3 = pnand %p3641_p2, %p3635_p13 }
  0x43   :  { %3645 = shalt.err (!%p3642_p3)
}
  0x44   :  { %s3706_s0 = smov 128   ;;  %s3707_s14 = smov 8  }
  0x45   :  { %53 = dma.hbm_to_vmem [thread:$0]  %s3928_s3, 2048, %s3789_s18, [#allocation6], %s3706_s0, %s3706_s0, %s3707_s14  }
  0x46   :  { %s3708_s17 = smov [#allocation10]   ;;  %s3646_s22 = scalar_lea.hbm %s3932_s7, 28672 }
  0x47   :  { %s75_s19 = sshll.u32 %s3708_s17, 4  ;;  %p3647_p4 = scmp.ne.s32.totalorder %s3932_s7, %s3646_s22  ;;  %s76_s19 = int_to_ptr.vmem [resolvable:$true] %s75_s19 }
  0x48   :  { %p3650_p5 = scmp.lt.u32.totalorder %s3646_s22, %s3932_s7 }
  0x4a   :  { %p3652_p6 = pnand %p3650_p5, %p3647_p4 }
  0x4c   :  { %3655 = shalt.err (!%p3652_p6)
}
  0x4d   :  { %s3656_s24 = scalar_lea.vmem %s76_s19, 28672  ;;  %p3661_p8 = scmp.lt.s32.totalorder %s76_s19, %s76_s19 }
  0x4e   :  { %p3657_p7 = scmp.ne.s32.totalorder %s76_s19, %s3656_s24  ;;  %p3662_p9 = scmp.lt.s32.totalorder %s3656_s24, %s3656_s24 }
  0x50   :  { %p3663_p10 = por %p3662_p9, %p3661_p8 }
  0x52   :  { %p3664_p11 = pnand %p3663_p10, %p3657_p7 }
  0x54   :  { %3667 = shalt.err (!%p3664_p11)
}
  0x55   :  { %s3709_s3 = smov 448   ;;  %s3710_s18 = smov 28  }
  0x56   :  { %81 = dma.hbm_to_vmem [thread:$0]  %s3932_s7, 28672, %s76_s19, [#allocation9], %s3709_s3, %s3709_s3, %s3710_s18  }
  0x57   :  { %3690 = dma.done.wait [#allocation3], 64  }
  0x58   :  { %3691 = vsyncadd [#allocation3], 4294967232 }
  0x59   :  { %3692 = dma.done.wait [#allocation6], 2304  }
  0x5a   :  { %3693 = vsyncadd [#allocation6], 4294964992 }
  0x5b   :  { %3694 = dma.done.wait [#allocation9], 36864  }
  0x5c   :  { %3695 = vsyncadd [#allocation9], 4294930432  ;;  %v3711_v0 = vmov 0.0   ;;  %vm3712_vm0 = vmmov 0   ;;  %v3088_v1 = vld [vmem:[#allocation5] sm:$0xff]   ;;  %v3089_v2 = vld [vmem:[#allocation5 + $0x8] sm:$0xff]  }
  0x5d   :  { %3045 = vmatprep.subr.bf16.mxu1 %v3711_v0  ;;  %3049 = vmatprep.mubr.msk.bf16.mxu1 %vm3712_vm0, %v3711_v0  ;;  %v3092_v3 = vld [vmem:[#allocation7 + $0x4] ss:$8 sps:$4 sm:$0xff]   ;;  %vm124_vm1 = vcmask 261120   ;;  %v3090_v5 = vld [vmem:[#allocation7] ss:$8 sps:$4 sm:$0xff]   ;;  %v3713_v20 = vmov 0  }
  0x5e   :  { %3046 = vmatpush3.bf16.msra.mxu1 %v3088_v1  ;;  %v100_v4 = vld [vmem:[#allocation2] sm:$0xf]  ;;  %v3095_v6 = vld [vmem:[#allocation7 + $0x14] ss:$8 sps:$4 sm:$0xff]   ;;  %v3093_v7 = vld [vmem:[#allocation7 + $0x10] ss:$8 sps:$4 sm:$0xff]  }
  0x5f   :  { %3047 = vmatprep.subr.bf16.mxu1 %v3711_v0  ;;  %v3098_v8 = vld [vmem:[#allocation7 + $0x24] ss:$8 sps:$4 sm:$0xff]   ;;  %v3096_v9 = vld [vmem:[#allocation7 + $0x20] ss:$8 sps:$4 sm:$0xff]   ;;  %v3101_v10 = vld [vmem:[#allocation7 + $0x34] ss:$8 sps:$4 sm:$0xff]  }
  0x60   :  { %v3099_v11 = vld [vmem:[#allocation7 + $0x30] ss:$8 sps:$4 sm:$0xff]   ;;  %v3104_v12 = vld [vmem:[#allocation7 + $0x44] ss:$8 sps:$4 sm:$0xff]   ;;  %v3102_v13 = vld [vmem:[#allocation7 + $0x40] ss:$8 sps:$4 sm:$0xff]  }
  0x61   :  { %v3107_v14 = vld [vmem:[#allocation7 + $0x54] ss:$8 sps:$4 sm:$0xff]   ;;  %v3105_v15 = vld [vmem:[#allocation7 + $0x50] ss:$8 sps:$4 sm:$0xff]   ;;  %v3110_v16 = vld [vmem:[#allocation7 + $0x64] ss:$8 sps:$4 sm:$0xff]  }
  0x62   :  { %3048 = vmatpush3.bf16.msra.mxu1 %v3089_v2  ;;  %v3108_v17 = vld [vmem:[#allocation7 + $0x60] ss:$8 sps:$4 sm:$0xff]   ;;  %v3113_v18 = vld [vmem:[#allocation7 + $0x74] ss:$8 sps:$4 sm:$0xff]   ;;  %v3111_v19 = vld [vmem:[#allocation7 + $0x70] ss:$8 sps:$4 sm:$0xff]  }
  0x63   :  { %278 = vmatprep.subr.bf16.mxu1 %v3092_v3  ;;  %v3114_v21 = vld [vmem:[#allocation8 + $0x4] ss:$16 sps:$4 sm:$0xff]   ;;  %v3118_v22 = vld [vmem:[#allocation8 + $0xc] ss:$16 sps:$4 sm:$0xff]   ;;  %v3119_v23 = vld [vmem:[#allocation8] ss:$16 sps:$4 sm:$0xff]  }
  0x64   :  { %v3120_v24 = vld [vmem:[#allocation8 + $0x24] ss:$16 sps:$4 sm:$0xff]   ;;  %729 = vmatprep.subr.bf16.mxu0 %v3114_v21  ;;  %v3125_v25 = vld [vmem:[#allocation8 + $0x20] ss:$16 sps:$4 sm:$0xff]   ;;  %v3116_v57 = vld [vmem:[#allocation8 + $0x8] ss:$16 sps:$4 sm:$0xff]  }
  0x65   :  { %3050 = vmatmul.mubr.msk.bf16.vlgmr.msra.gmra.mrb[0].mxu1 %vm124_vm1, %v100_v4  ;;  %730 = vmatpush1.bf16.msra.mxu0 %v3119_v23  ;;  %v3126_v26 = vld [vmem:[#allocation8 + $0x44] ss:$16 sps:$4 sm:$0xff]   ;;  %v3131_v27 = vld [vmem:[#allocation8 + $0x40] ss:$16 sps:$4 sm:$0xff]   ;;  %v3124_v59 = vld [vmem:[#allocation8 + $0x2c] ss:$16 sps:$4 sm:$0xff]  }
  0x66   :  { %279 = vmatpush1.bf16.msra.mxu1 %v3090_v5  ;;  %310 = vmatprep.mubr.bf16.mxu1 %v3713_v20  ;;  %v3132_v28 = vld [vmem:[#allocation8 + $0x64] ss:$16 sps:$4 sm:$0xff]   ;;  %v3137_v29 = vld [vmem:[#allocation8 + $0x60] ss:$16 sps:$4 sm:$0xff]   ;;  %v3122_v60 = vld [vmem:[#allocation8 + $0x28] ss:$16 sps:$4 sm:$0xff]  }
  0x67   :  { %280 = vmatprep.subr.bf16.mxu1 %v3095_v6  ;;  %731 = vmatprep.subr.bf16.mxu0 %v3120_v24  ;;  %v3138_v30 = vld [vmem:[#allocation8 + $0x84] ss:$16 sps:$4 sm:$0xff]   ;;  %v3143_v31 = vld [vmem:[#allocation8 + $0x80] ss:$16 sps:$4 sm:$0xff]   ;;  %v3130_v61 = vld [vmem:[#allocation8 + $0x4c] ss:$16 sps:$4 sm:$0xff]  }
  0x68   :  { %v3144_v32 = vld [vmem:[#allocation8 + $0xa4] ss:$16 sps:$4 sm:$0xff]   ;;  %v3149_v33 = vld [vmem:[#allocation8 + $0xa0] ss:$16 sps:$4 sm:$0xff]   ;;  %v3128_v62 = vld [vmem:[#allocation8 + $0x48] ss:$16 sps:$4 sm:$0xff]  }
  0x69   :  { %732 = vmatpush1.bf16.msra.mxu0 %v3125_v25  ;;  %v3150_v34 = vld [vmem:[#allocation8 + $0xc4] ss:$16 sps:$4 sm:$0xff]   ;;  %v3155_v35 = vld [vmem:[#allocation8 + $0xc0] ss:$16 sps:$4 sm:$0xff]   ;;  %v3136_v63 = vld [vmem:[#allocation8 + $0x6c] ss:$16 sps:$4 sm:$0xff]  }
  0x6a   :  { %281 = vmatpush1.bf16.msra.mxu1 %v3093_v7  ;;  %733 = vmatprep.subr.bf16.mxu0 %v3126_v26  ;;  %v3156_v36 = vld [vmem:[#allocation8 + $0xe4] ss:$16 sps:$4 sm:$0xff]   ;;  %v3161_v37 = vld [vmem:[#allocation8 + $0xe0] ss:$16 sps:$4 sm:$0xff]   ;;  %v3134_v0 = vld [vmem:[#allocation8 + $0x68] ss:$16 sps:$4 sm:$0xff]  }
  0x6b   :  { %282 = vmatprep.subr.bf16.mxu1 %v3098_v8  ;;  %v3162_v38 = vld [vmem:[#allocation8 + $0x104] ss:$16 sps:$4 sm:$0xff]   ;;  %v3167_v39 = vld [vmem:[#allocation8 + $0x100] ss:$16 sps:$4 sm:$0xff]   ;;  %v3142_v1 = vld [vmem:[#allocation8 + $0x8c] ss:$16 sps:$4 sm:$0xff]  }
  0x6c   :  { %v3168_v40 = vld [vmem:[#allocation8 + $0x124] ss:$16 sps:$4 sm:$0xff]   ;;  %v3173_v41 = vld [vmem:[#allocation8 + $0x120] ss:$16 sps:$4 sm:$0xff]   ;;  %v3140_v2 = vld [vmem:[#allocation8 + $0x88] ss:$16 sps:$4 sm:$0xff]  }
  0x6d   :  { %734 = vmatpush1.bf16.msra.mxu0 %v3131_v27  ;;  %v3174_v42 = vld [vmem:[#allocation8 + $0x144] ss:$16 sps:$4 sm:$0xff]   ;;  %v3179_v43 = vld [vmem:[#allocation8 + $0x140] ss:$16 sps:$4 sm:$0xff]   ;;  %v3148_v3 = vld [vmem:[#allocation8 + $0xac] ss:$16 sps:$4 sm:$0xff]  }
  0x6e   :  { %283 = vmatpush1.bf16.msra.mxu1 %v3096_v9  ;;  %735 = vmatprep.subr.bf16.mxu0 %v3132_v28  ;;  %v3180_v44 = vld [vmem:[#allocation8 + $0x164] ss:$16 sps:$4 sm:$0xff]   ;;  %v3185_v45 = vld [vmem:[#allocation8 + $0x160] ss:$16 sps:$4 sm:$0xff]   ;;  %v3146_v4 = vld [vmem:[#allocation8 + $0xa8] ss:$16 sps:$4 sm:$0xff]  }
  0x6f   :  { %284 = vmatprep.subr.bf16.mxu1 %v3101_v10  ;;  %v3186_v46 = vld [vmem:[#allocation8 + $0x184] ss:$16 sps:$4 sm:$0xff]   ;;  %v3191_v47 = vld [vmem:[#allocation8 + $0x180] ss:$16 sps:$4 sm:$0xff]   ;;  %v3154_v5 = vld [vmem:[#allocation8 + $0xcc] ss:$16 sps:$4 sm:$0xff]  }
  0x70   :  { %v3192_v48 = vld [vmem:[#allocation8 + $0x1a4] ss:$16 sps:$4 sm:$0xff]   ;;  %v3197_v49 = vld [vmem:[#allocation8 + $0x1a0] ss:$16 sps:$4 sm:$0xff]   ;;  %v3152_v6 = vld [vmem:[#allocation8 + $0xc8] ss:$16 sps:$4 sm:$0xff]  }
  0x71   :  { %736 = vmatpush1.bf16.msra.mxu0 %v3137_v29  ;;  %v2682_v50 = vld [vmem:[%s3927_s2] ss:$0 sm:$0xff]  ;;  %v3160_v7 = vld [vmem:[#allocation8 + $0xec] ss:$16 sps:$4 sm:$0xff]   ;;  %v3158_v8 = vld [vmem:[#allocation8 + $0xe8] ss:$16 sps:$4 sm:$0xff]  }
  0x72   :  { %285 = vmatpush1.bf16.msra.mxu1 %v3099_v11  ;;  %737 = vmatprep.subr.bf16.mxu0 %v3138_v30  ;;  %v3166_v9 = vld [vmem:[#allocation8 + $0x10c] ss:$16 sps:$4 sm:$0xff]   ;;  %v3164_v10 = vld [vmem:[#allocation8 + $0x108] ss:$16 sps:$4 sm:$0xff]   ;;  %v3198_v21 = vld [vmem:[#allocation8 + $0x1c4] ss:$16 sps:$4 sm:$0xff]  }
  0x73   :  { %286 = vmatprep.subr.bf16.mxu1 %v3104_v12  ;;  %v3172_v11 = vld [vmem:[#allocation8 + $0x12c] ss:$16 sps:$4 sm:$0xff]   ;;  %v3170_v12 = vld [vmem:[#allocation8 + $0x128] ss:$16 sps:$4 sm:$0xff]   ;;  %v3203_v24 = vld [vmem:[#allocation8 + $0x1c0] ss:$16 sps:$4 sm:$0xff]  }
  0x74   :  { %v3194_v20 = vld [vmem:[#allocation8 + $0x1a8] ss:$16 sps:$4 sm:$0xff]   ;;  %v3204_v25 = vld [vmem:[#allocation8 + $0x1e4] ss:$16 sps:$4 sm:$0xff]   ;;  %v3208_v26 = vld [vmem:[#allocation8 + $0x1ec] ss:$16 sps:$4 sm:$0xff]  }
  0x75   :  { %738 = vmatpush1.bf16.msra.mxu0 %v3143_v31  ;;  %v3200_v23 = vld [vmem:[#allocation8 + $0x1c8] ss:$16 sps:$4 sm:$0xff]   ;;  %v3209_v28 = vld [vmem:[#allocation8 + $0x1e0] ss:$16 sps:$4 sm:$0xff]   ;;  %v188_v31 = vlaneseq }
  0x76   :  { %287 = vmatpush1.bf16.msra.mxu1 %v3102_v13  ;;  %739 = vmatprep.subr.bf16.mxu0 %v3144_v32  ;;  %v3178_v13 = vld [vmem:[#allocation8 + $0x14c] ss:$16 sps:$4 sm:$0xff]   ;;  %v3206_v27 = vld [vmem:[#allocation8 + $0x1e8] ss:$16 sps:$4 sm:$0xff]   ;;  %v3212_v29 = vld [vmem:[#allocation10 + $0x4] ss:$28 sps:$4 sm:$0xff]  }
  0x77   :  { %288 = vmatprep.subr.bf16.mxu1 %v3107_v14  ;;  %v3176_v14 = vld [vmem:[#allocation8 + $0x148] ss:$16 sps:$4 sm:$0xff]   ;;  %v3835_v32 = vshrl.u32 %v188_v31, 7 }
  0x78   :  { %v3215_v30 = vld [vmem:[#allocation10 + $0xc] ss:$28 sps:$4 sm:$0xff]  }
  0x79   :  { %740 = vmatpush1.bf16.msra.mxu0 %v3149_v33  ;;  %v3838_v33 = vsub.s32 0, %v3835_v32  ;;  %v3287_v31 = vld [vmem:[#allocation10 + $0x2ac] ss:$28 sps:$4 sm:$0xff]  }
  0x7a   :  { %289 = vmatpush1.bf16.msra.mxu1 %v3105_v15  ;;  %741 = vmatprep.subr.bf16.mxu0 %v3150_v34  ;;  %v3184_v15 = vld [vmem:[#allocation8 + $0x16c] ss:$16 sps:$4 sm:$0xff]   ;;  %v186_v34 = vld [vmem:[%s3929_s4] sm:$0x3] }
  0x7b   :  { %290 = vmatprep.subr.bf16.mxu1 %v3110_v16  ;;  %v3182_v16 = vld [vmem:[#allocation8 + $0x168] ss:$16 sps:$4 sm:$0xff]  }
  0x7d   :  { %742 = vmatpush1.bf16.msra.mxu0 %v3155_v35  ;;  %v3844_v35 = vsub.s32 1, %v3835_v32 }
  0x7e   :  { %291 = vmatpush1.bf16.msra.mxu1 %v3108_v17  ;;  %743 = vmatprep.subr.bf16.mxu0 %v3156_v36  ;;  %v3190_v17 = vld [vmem:[#allocation8 + $0x18c] ss:$16 sps:$4 sm:$0xff]   ;;  %v191_v36 = vrot.slane %v186_v34, %v3838_v33 }
  0x7f   :  { %292 = vmatprep.subr.bf16.mxu1 %v3113_v18  ;;  %v3188_v18 = vld [vmem:[#allocation8 + $0x188] ss:$16 sps:$4 sm:$0xff]  }
  0x81   :  { %744 = vmatpush1.bf16.msra.mxu0 %v3161_v37  ;;  %v195_v37 = vrot.slane %v186_v34, %v3844_v35  ;;  %v3282_v34 = vld [vmem:[#allocation10 + $0x2a0] ss:$28 sps:$4 sm:$0xff]  }
  0x82   :  { %293 = vmatpush1.bf16.msra.mxu1 %v3111_v19  ;;  %745 = vmatprep.subr.bf16.mxu0 %v3162_v38  ;;  %v3196_v19 = vld [vmem:[#allocation8 + $0x1ac] ss:$16 sps:$4 sm:$0xff]  }
  0x83   :  { %770 = vmatprep.subr.bf16.mxu1 %v3118_v22  ;;  %v3202_v22 = vld [vmem:[#allocation8 + $0x1cc] ss:$16 sps:$4 sm:$0xff]  }
  0x85   :  { %746 = vmatpush1.bf16.msra.mxu0 %v3167_v39 }
  0x86   :  { %747 = vmatprep.subr.bf16.mxu0 %v3168_v40 }
  0x89   :  { %748 = vmatpush1.bf16.msra.mxu0 %v3173_v41 }
  0x8a   :  { %749 = vmatprep.subr.bf16.mxu0 %v3174_v42 }
  0x8d   :  { %750 = vmatpush1.bf16.msra.mxu0 %v3179_v43 }
  0x8e   :  { %751 = vmatprep.subr.bf16.mxu0 %v3180_v44 }
  0x91   :  { %752 = vmatpush1.bf16.msra.mxu0 %v3185_v45 }
  0x92   :  { %753 = vmatprep.subr.bf16.mxu0 %v3186_v46 }
  0x95   :  { %754 = vmatpush1.bf16.msra.mxu0 %v3191_v47  ;;  %v3210_v47 = vld [vmem:[#allocation10] ss:$28 sps:$4 sm:$0xff]  }
  0x96   :  { %755 = vmatprep.subr.bf16.mxu0 %v3192_v48  ;;  %v3213_v48 = vld [vmem:[#allocation10 + $0x8] ss:$28 sps:$4 sm:$0xff]  }
  0x99   :  { %756 = vmatpush1.bf16.msra.mxu0 %v3197_v49 }
  0x9a   :  { %757 = vmatprep.subr.bf16.mxu0 %v3198_v21  ;;  %v3267_v21 = vld [vmem:[#allocation10 + $0x200] ss:$28 sps:$4 sm:$0xff]  }
  0x9d   :  { %758 = vmatpush1.bf16.msra.mxu0 %v3203_v24  ;;  %v3270_v24 = vld [vmem:[#allocation10 + $0x230] ss:$28 sps:$4 sm:$0xff]  }
  0x9e   :  { %759 = vmatprep.subr.bf16.mxu0 %v3204_v25  ;;  %v3273_v25 = vld [vmem:[#allocation10 + $0x238] ss:$28 sps:$4 sm:$0xff]  }
  0xa1   :  { %760 = vmatpush1.bf16.msra.mxu0 %v3209_v28  ;;  %v3276_v28 = vld [vmem:[#allocation10 + $0x268] ss:$28 sps:$4 sm:$0xff]  }
  0xa2   :  { %2264 = vmatprep.subr.bf16.mxu0 %v3212_v29  ;;  %v3279_v29 = vld [vmem:[#allocation10 + $0x270] ss:$28 sps:$4 sm:$0xff]  }
 0x138   :  { %v162_v51 = vpop.f32.mrb[0].mxu1 }
 0x139   :  { %v163_v52 = vadd.f32 %v2682_v50, %v162_v51  ;;  %v3051_v53 = vpop.f32.mrb[1].mxu1  ;;  %v3218_v50 = vld [vmem:[#allocation10 + $0x3c] ss:$28 sps:$4 sm:$0xff]   ;;  %v3221_v51 = vld [vmem:[#allocation10 + $0x44] ss:$28 sps:$4 sm:$0xff]  }
 0x13a   :  { %v165_v54 = vpop.f32.mrb[2].mxu1  ;;  %v3219_v53 = vld [vmem:[#allocation10 + $0x40] ss:$28 sps:$4 sm:$0xff]  }
 0x13b   :  { %v168_v55 = vmax.f32 %v163_v52, 0.0  ;;  %v3052_v56 = vpop.f32.mrb[3].mxu1  ;;  %v3216_v52 = vld [vmem:[#allocation10 + $0x38] ss:$28 sps:$4 sm:$0xff]  }
 0x13c   :  { %v3224_v54 = vld [vmem:[#allocation10 + $0x74] ss:$28 sps:$4 sm:$0xff]  }
 0x13d   :  { %v169_v58 = vpack.c.bf16 %v168_v55, %v168_v55  ;;  %v3227_v55 = vld [vmem:[#allocation10 + $0x7c] ss:$28 sps:$4 sm:$0xff]   ;;  %v3222_v56 = vld [vmem:[#allocation10 + $0x70] ss:$28 sps:$4 sm:$0xff]  }
 0x13f   :  { %311 = vmatmul.mubr.bf16.vlgmr.msra.gmra.mrb[4].mxu1 %v169_v58  ;;  %v3230_v58 = vld [vmem:[#allocation10 + $0xac] ss:$28 sps:$4 sm:$0xff]  }
 0x140   :  { %771 = vmatpush1.bf16.msra.mxu1 %v3116_v57  ;;  %v3225_v57 = vld [vmem:[#allocation10 + $0x78] ss:$28 sps:$4 sm:$0xff]  }
 0x141   :  { %772 = vmatprep.subr.bf16.mxu1 %v3124_v59  ;;  %v3233_v59 = vld [vmem:[#allocation10 + $0xb4] ss:$28 sps:$4 sm:$0xff]  }
 0x144   :  { %773 = vmatpush1.bf16.msra.mxu1 %v3122_v60  ;;  %v3228_v60 = vld [vmem:[#allocation10 + $0xa8] ss:$28 sps:$4 sm:$0xff]  }
 0x145   :  { %774 = vmatprep.subr.bf16.mxu1 %v3130_v61  ;;  %v3231_v61 = vld [vmem:[#allocation10 + $0xb0] ss:$28 sps:$4 sm:$0xff]  }
 0x148   :  { %775 = vmatpush1.bf16.msra.mxu1 %v3128_v62  ;;  %v3236_v62 = vld [vmem:[#allocation10 + $0xe4] ss:$28 sps:$4 sm:$0xff]  }
 0x149   :  { %776 = vmatprep.subr.bf16.mxu1 %v3136_v63  ;;  %v3239_v63 = vld [vmem:[#allocation10 + $0xec] ss:$28 sps:$4 sm:$0xff]  }
 0x14c   :  { %777 = vmatpush1.bf16.msra.mxu1 %v3134_v0  ;;  %v3234_v0 = vld [vmem:[#allocation10 + $0xe0] ss:$28 sps:$4 sm:$0xff]  }
 0x14d   :  { %778 = vmatprep.subr.bf16.mxu1 %v3142_v1  ;;  %v3237_v1 = vld [vmem:[#allocation10 + $0xe8] ss:$28 sps:$4 sm:$0xff]  }
 0x150   :  { %779 = vmatpush1.bf16.msra.mxu1 %v3140_v2  ;;  %v3242_v2 = vld [vmem:[#allocation10 + $0x11c] ss:$28 sps:$4 sm:$0xff]  }
 0x151   :  { %780 = vmatprep.subr.bf16.mxu1 %v3148_v3  ;;  %v3245_v3 = vld [vmem:[#allocation10 + $0x124] ss:$28 sps:$4 sm:$0xff]  }
 0x154   :  { %781 = vmatpush1.bf16.msra.mxu1 %v3146_v4  ;;  %v3240_v4 = vld [vmem:[#allocation10 + $0x118] ss:$28 sps:$4 sm:$0xff]  }
 0x155   :  { %782 = vmatprep.subr.bf16.mxu1 %v3154_v5  ;;  %v3243_v5 = vld [vmem:[#allocation10 + $0x120] ss:$28 sps:$4 sm:$0xff]  }
 0x158   :  { %783 = vmatpush1.bf16.msra.mxu1 %v3152_v6  ;;  %v3248_v6 = vld [vmem:[#allocation10 + $0x154] ss:$28 sps:$4 sm:$0xff]  }
 0x159   :  { %784 = vmatprep.subr.bf16.mxu1 %v3160_v7  ;;  %v3251_v7 = vld [vmem:[#allocation10 + $0x15c] ss:$28 sps:$4 sm:$0xff]  }
 0x15c   :  { %785 = vmatpush1.bf16.msra.mxu1 %v3158_v8  ;;  %v3246_v8 = vld [vmem:[#allocation10 + $0x150] ss:$28 sps:$4 sm:$0xff]  }
 0x15d   :  { %786 = vmatprep.subr.bf16.mxu1 %v3166_v9  ;;  %v3249_v9 = vld [vmem:[#allocation10 + $0x158] ss:$28 sps:$4 sm:$0xff]  }
 0x160   :  { %787 = vmatpush1.bf16.msra.mxu1 %v3164_v10  ;;  %v3254_v10 = vld [vmem:[#allocation10 + $0x18c] ss:$28 sps:$4 sm:$0xff]  }
 0x161   :  { %788 = vmatprep.subr.bf16.mxu1 %v3172_v11  ;;  %v3257_v11 = vld [vmem:[#allocation10 + $0x194] ss:$28 sps:$4 sm:$0xff]  }
 0x164   :  { %789 = vmatpush1.bf16.msra.mxu1 %v3170_v12  ;;  %v3252_v12 = vld [vmem:[#allocation10 + $0x188] ss:$28 sps:$4 sm:$0xff]  }
 0x165   :  { %790 = vmatprep.subr.bf16.mxu1 %v3178_v13  ;;  %v3255_v13 = vld [vmem:[#allocation10 + $0x190] ss:$28 sps:$4 sm:$0xff]  }
 0x168   :  { %791 = vmatpush1.bf16.msra.mxu1 %v3176_v14  ;;  %v3260_v14 = vld [vmem:[#allocation10 + $0x1c4] ss:$28 sps:$4 sm:$0xff]  }
 0x169   :  { %792 = vmatprep.subr.bf16.mxu1 %v3184_v15  ;;  %v3263_v15 = vld [vmem:[#allocation10 + $0x1cc] ss:$28 sps:$4 sm:$0xff]  }
 0x16c   :  { %793 = vmatpush1.bf16.msra.mxu1 %v3182_v16  ;;  %v3258_v16 = vld [vmem:[#allocation10 + $0x1c0] ss:$28 sps:$4 sm:$0xff]  }
 0x16d   :  { %794 = vmatprep.subr.bf16.mxu1 %v3190_v17  ;;  %v3261_v17 = vld [vmem:[#allocation10 + $0x1c8] ss:$28 sps:$4 sm:$0xff]  }
 0x170   :  { %795 = vmatpush1.bf16.msra.mxu1 %v3188_v18  ;;  %v3266_v18 = vld [vmem:[#allocation10 + $0x1fc] ss:$28 sps:$4 sm:$0xff]  }
 0x171   :  { %796 = vmatprep.subr.bf16.mxu1 %v3196_v19  ;;  %v3269_v19 = vld [vmem:[#allocation10 + $0x204] ss:$28 sps:$4 sm:$0xff]  }
 0x174   :  { %797 = vmatpush1.bf16.msra.mxu1 %v3194_v20  ;;  %v3264_v20 = vld [vmem:[#allocation10 + $0x1f8] ss:$28 sps:$4 sm:$0xff]  }
 0x175   :  { %798 = vmatprep.subr.bf16.mxu1 %v3202_v22  ;;  %v3272_v22 = vld [vmem:[#allocation10 + $0x234] ss:$28 sps:$4 sm:$0xff]  }
 0x178   :  { %799 = vmatpush1.bf16.msra.mxu1 %v3200_v23  ;;  %v3275_v23 = vld [vmem:[#allocation10 + $0x23c] ss:$28 sps:$4 sm:$0xff]  }
 0x179   :  { %800 = vmatprep.subr.bf16.mxu1 %v3208_v26  ;;  %v3278_v26 = vld [vmem:[#allocation10 + $0x26c] ss:$28 sps:$4 sm:$0xff]  }
 0x17c   :  { %801 = vmatpush1.bf16.msra.mxu1 %v3206_v27  ;;  %v3281_v27 = vld [vmem:[#allocation10 + $0x274] ss:$28 sps:$4 sm:$0xff]  }
 0x17d   :  { %2346 = vmatprep.subr.bf16.mxu1 %v3215_v30  ;;  %v3284_v30 = vld [vmem:[#allocation10 + $0x2a4] ss:$28 sps:$4 sm:$0xff]  }
 0x212   :  { %v312_v38 = vpop.f32.mrb[4].mxu1 }
 0x213   :  { %v313_v39 = vadd.f32 %v312_v38, %v191_v36  ;;  %v314_v40 = vpop.f32.mrb[5].mxu1  ;;  %v3285_v36 = vld [vmem:[#allocation10 + $0x2a8] ss:$28 sps:$4 sm:$0xff]  }
 0x214   :  { %v315_v41 = vadd.f32 %v314_v40, %v195_v37  ;;  %v316_v42 = vpop.f32.mrb[6].mxu1  ;;  %v3290_v37 = vld [vmem:[#allocation10 + $0x2dc] ss:$28 sps:$4 sm:$0xff]   ;;  %v3293_v38 = vld [vmem:[#allocation10 + $0x2e4] ss:$28 sps:$4 sm:$0xff]  }
 0x215   :  { %v319_v43 = vmax.f32 %v313_v39, 0.0  ;;  %v317_v44 = vpop.f32.mrb[7].mxu1  ;;  %v3288_v39 = vld [vmem:[#allocation10 + $0x2d8] ss:$28 sps:$4 sm:$0xff]   ;;  %v3291_v40 = vld [vmem:[#allocation10 + $0x2e0] ss:$28 sps:$4 sm:$0xff]  }
 0x216   :  { %v320_v45 = vmax.f32 %v315_v41, 0.0  ;;  %v3296_v41 = vld [vmem:[#allocation10 + $0x314] ss:$28 sps:$4 sm:$0xff]   ;;  %v3299_v42 = vld [vmem:[#allocation10 + $0x31c] ss:$28 sps:$4 sm:$0xff]  }
 0x217   :  { %v321_v49 = vpack.c.bf16 %v319_v43, %v319_v43  ;;  %v3294_v43 = vld [vmem:[#allocation10 + $0x310] ss:$28 sps:$4 sm:$0xff]   ;;  %v3297_v44 = vld [vmem:[#allocation10 + $0x318] ss:$28 sps:$4 sm:$0xff]  }
 0x218   :  { %v322_v46 = vpack.c.bf16 %v320_v45, %v320_v45  ;;  %v3302_v45 = vld [vmem:[#allocation10 + $0x34c] ss:$28 sps:$4 sm:$0xff]  }
 0x21a   :  { %761 = vmatprep.mubr.bf16.mxu0 %v322_v46  ;;  %802 = vmatprep.mubr.bf16.mxu1 %v322_v46  ;;  %v3305_v46 = vld [vmem:[#allocation10 + $0x354] ss:$28 sps:$4 sm:$0xff]  }
 0x21b   :  { %762 = vmatmul.mubr.bf16.vlgmr.msra.gmra.mrb[0].mxu0 %v321_v49  ;;  %803 = vmatmul.mubr.bf16.vlgmr.msra.gmra.mrb[8].mxu1 %v321_v49  ;;  %v3308_v49 = vld [vmem:[#allocation10 + $0x384] ss:$28 sps:$4 sm:$0xff]  }
 0x21c   :  { %2265 = vmatpush1.bf16.msra.mxu0 %v3210_v47  ;;  %2347 = vmatpush1.bf16.msra.mxu1 %v3213_v48  ;;  %v3300_v47 = vld [vmem:[#allocation10 + $0x348] ss:$28 sps:$4 sm:$0xff]   ;;  %v3303_v48 = vld [vmem:[#allocation10 + $0x350] ss:$28 sps:$4 sm:$0xff]  }
 0x21d   :  { %2266 = vmatprep.subr.bf16.mxu0 %v3218_v50  ;;  %2348 = vmatprep.subr.bf16.mxu1 %v3221_v51  ;;  %v3311_v50 = vld [vmem:[#allocation10 + $0x38c] ss:$28 sps:$4 sm:$0xff]   ;;  %v3851_v51 = vld [vmem:[%s3931_s6] sm:$0xf] }
 0x220   :  { %2267 = vmatpush1.bf16.msra.mxu0 %v3216_v52  ;;  %2349 = vmatpush1.bf16.msra.mxu1 %v3219_v53  ;;  %v403_v52 = vsub.s32 3, %v3835_v32  ;;  %v392_v53 = vrot.slane %v3851_v51, %v3838_v33 }
 0x221   :  { %2268 = vmatprep.subr.bf16.mxu0 %v3224_v54  ;;  %2350 = vmatprep.subr.bf16.mxu1 %v3227_v55  ;;  %v396_v54 = vrot.slane %v3851_v51, %v3844_v35 }
 0x222   :  { %v404_v55 = vrot.slane %v3851_v51, %v403_v52 }
 0x224   :  { %2269 = vmatpush1.bf16.msra.mxu0 %v3222_v56  ;;  %2351 = vmatpush1.bf16.msra.mxu1 %v3225_v57 }
 0x225   :  { %2270 = vmatprep.subr.bf16.mxu0 %v3230_v58  ;;  %2352 = vmatprep.subr.bf16.mxu1 %v3233_v59 }
 0x228   :  { %2271 = vmatpush1.bf16.msra.mxu0 %v3228_v60  ;;  %2353 = vmatpush1.bf16.msra.mxu1 %v3231_v61 }
 0x229   :  { %2272 = vmatprep.subr.bf16.mxu0 %v3236_v62  ;;  %2354 = vmatprep.subr.bf16.mxu1 %v3239_v63 }
 0x22c   :  { %2273 = vmatpush1.bf16.msra.mxu0 %v3234_v0  ;;  %2355 = vmatpush1.bf16.msra.mxu1 %v3237_v1 }
 0x22d   :  { %2274 = vmatprep.subr.bf16.mxu0 %v3242_v2  ;;  %2356 = vmatprep.subr.bf16.mxu1 %v3245_v3 }
 0x230   :  { %2275 = vmatpush1.bf16.msra.mxu0 %v3240_v4  ;;  %2357 = vmatpush1.bf16.msra.mxu1 %v3243_v5 }
 0x231   :  { %2276 = vmatprep.subr.bf16.mxu0 %v3248_v6  ;;  %2358 = vmatprep.subr.bf16.mxu1 %v3251_v7  ;;  %v3306_v7 = vld [vmem:[#allocation10 + $0x380] ss:$28 sps:$4 sm:$0xff]  }
 0x234   :  { %2277 = vmatpush1.bf16.msra.mxu0 %v3246_v8  ;;  %2359 = vmatpush1.bf16.msra.mxu1 %v3249_v9  ;;  %v3309_v8 = vld [vmem:[#allocation10 + $0x388] ss:$28 sps:$4 sm:$0xff]  }
 0x235   :  { %2278 = vmatprep.subr.bf16.mxu0 %v3254_v10  ;;  %2360 = vmatprep.subr.bf16.mxu1 %v3257_v11  ;;  %v3314_v10 = vld [vmem:[#allocation10 + $0x3bc] ss:$28 sps:$4 sm:$0xff]   ;;  %v3317_v11 = vld [vmem:[#allocation10 + $0x3c4] ss:$28 sps:$4 sm:$0xff]  }
 0x238   :  { %2279 = vmatpush1.bf16.msra.mxu0 %v3252_v12  ;;  %2361 = vmatpush1.bf16.msra.mxu1 %v3255_v13  ;;  %v3312_v13 = vld [vmem:[#allocation10 + $0x3b8] ss:$28 sps:$4 sm:$0xff]  }
 0x239   :  { %2280 = vmatprep.subr.bf16.mxu0 %v3260_v14  ;;  %2362 = vmatprep.subr.bf16.mxu1 %v3263_v15  ;;  %v3315_v14 = vld [vmem:[#allocation10 + $0x3c0] ss:$28 sps:$4 sm:$0xff]   ;;  %v3320_v15 = vld [vmem:[#allocation10 + $0x3f4] ss:$28 sps:$4 sm:$0xff]  }
 0x23c   :  { %2281 = vmatpush1.bf16.msra.mxu0 %v3258_v16  ;;  %2363 = vmatpush1.bf16.msra.mxu1 %v3261_v17  ;;  %v3323_v16 = vld [vmem:[#allocation10 + $0x3fc] ss:$28 sps:$4 sm:$0xff]   ;;  %v3318_v17 = vld [vmem:[#allocation10 + $0x3f0] ss:$28 sps:$4 sm:$0xff]  }
 0x23d   :  { %2282 = vmatprep.subr.bf16.mxu0 %v3266_v18  ;;  %2364 = vmatprep.subr.bf16.mxu1 %v3269_v19  ;;  %v3321_v18 = vld [vmem:[#allocation10 + $0x3f8] ss:$28 sps:$4 sm:$0xff]   ;;  %v3326_v19 = vld [vmem:[#allocation10 + $0x42c] ss:$28 sps:$4 sm:$0xff]  }
 0x240   :  { %2283 = vmatpush1.bf16.msra.mxu0 %v3264_v20  ;;  %2365 = vmatpush1.bf16.msra.mxu1 %v3267_v21  ;;  %v3329_v20 = vld [vmem:[#allocation10 + $0x434] ss:$28 sps:$4 sm:$0xff]   ;;  %v3324_v21 = vld [vmem:[#allocation10 + $0x428] ss:$28 sps:$4 sm:$0xff]  }
 0x241   :  { %2284 = vmatprep.subr.bf16.mxu0 %v3272_v22  ;;  %2366 = vmatprep.subr.bf16.mxu1 %v3275_v23  ;;  %v3327_v22 = vld [vmem:[#allocation10 + $0x430] ss:$28 sps:$4 sm:$0xff]   ;;  %v3332_v23 = vld [vmem:[#allocation10 + $0x464] ss:$28 sps:$4 sm:$0xff]  }
 0x244   :  { %2285 = vmatpush1.bf16.msra.mxu0 %v3270_v24  ;;  %2367 = vmatpush1.bf16.msra.mxu1 %v3273_v25  ;;  %v3335_v24 = vld [vmem:[#allocation10 + $0x46c] ss:$28 sps:$4 sm:$0xff]   ;;  %v3330_v25 = vld [vmem:[#allocation10 + $0x460] ss:$28 sps:$4 sm:$0xff]  }
 0x245   :  { %2286 = vmatprep.subr.bf16.mxu0 %v3278_v26  ;;  %2368 = vmatprep.subr.bf16.mxu1 %v3281_v27  ;;  %v3333_v26 = vld [vmem:[#allocation10 + $0x468] ss:$28 sps:$4 sm:$0xff]   ;;  %v3338_v27 = vld [vmem:[#allocation10 + $0x49c] ss:$28 sps:$4 sm:$0xff]  }
 0x248   :  { %2287 = vmatpush1.bf16.msra.mxu0 %v3276_v28  ;;  %2369 = vmatpush1.bf16.msra.mxu1 %v3279_v29  ;;  %v3341_v28 = vld [vmem:[#allocation10 + $0x4a4] ss:$28 sps:$4 sm:$0xff]   ;;  %v3336_v29 = vld [vmem:[#allocation10 + $0x498] ss:$28 sps:$4 sm:$0xff]  }
 0x249   :  { %2288 = vmatprep.subr.bf16.mxu0 %v3284_v30  ;;  %2370 = vmatprep.subr.bf16.mxu1 %v3287_v31  ;;  %v3339_v30 = vld [vmem:[#allocation10 + $0x4a0] ss:$28 sps:$4 sm:$0xff]   ;;  %v3344_v31 = vld [vmem:[#allocation10 + $0x4d4] ss:$28 sps:$4 sm:$0xff]  }
 0x24c   :  { %2289 = vmatpush1.bf16.msra.mxu0 %v3282_v34  ;;  %2371 = vmatpush1.bf16.msra.mxu1 %v3285_v36  ;;  %v3347_v34 = vld [vmem:[#allocation10 + $0x4dc] ss:$28 sps:$4 sm:$0xff]   ;;  %v3342_v36 = vld [vmem:[#allocation10 + $0x4d0] ss:$28 sps:$4 sm:$0xff]  }
 0x24d   :  { %2290 = vmatprep.subr.bf16.mxu0 %v3290_v37  ;;  %2372 = vmatprep.subr.bf16.mxu1 %v3293_v38  ;;  %v3345_v37 = vld [vmem:[#allocation10 + $0x4d8] ss:$28 sps:$4 sm:$0xff]   ;;  %v3350_v38 = vld [vmem:[#allocation10 + $0x50c] ss:$28 sps:$4 sm:$0xff]  }
 0x250   :  { %2291 = vmatpush1.bf16.msra.mxu0 %v3288_v39  ;;  %2373 = vmatpush1.bf16.msra.mxu1 %v3291_v40  ;;  %v3353_v39 = vld [vmem:[#allocation10 + $0x514] ss:$28 sps:$4 sm:$0xff]   ;;  %v3348_v40 = vld [vmem:[#allocation10 + $0x508] ss:$28 sps:$4 sm:$0xff]  }
 0x251   :  { %2292 = vmatprep.subr.bf16.mxu0 %v3296_v41  ;;  %2374 = vmatprep.subr.bf16.mxu1 %v3299_v42  ;;  %v3351_v41 = vld [vmem:[#allocation10 + $0x510] ss:$28 sps:$4 sm:$0xff]   ;;  %v3356_v42 = vld [vmem:[#allocation10 + $0x544] ss:$28 sps:$4 sm:$0xff]  }
 0x254   :  { %2293 = vmatpush1.bf16.msra.mxu0 %v3294_v43  ;;  %2375 = vmatpush1.bf16.msra.mxu1 %v3297_v44  ;;  %v3359_v43 = vld [vmem:[#allocation10 + $0x54c] ss:$28 sps:$4 sm:$0xff]   ;;  %v3354_v44 = vld [vmem:[#allocation10 + $0x540] ss:$28 sps:$4 sm:$0xff]  }
 0x255   :  { %2294 = vmatprep.subr.bf16.mxu0 %v3302_v45  ;;  %2376 = vmatprep.subr.bf16.mxu1 %v3305_v46  ;;  %v3357_v45 = vld [vmem:[#allocation10 + $0x548] ss:$28 sps:$4 sm:$0xff]   ;;  %v3362_v46 = vld [vmem:[#allocation10 + $0x57c] ss:$28 sps:$4 sm:$0xff]  }
 0x258   :  { %2295 = vmatpush1.bf16.msra.mxu0 %v3300_v47  ;;  %2377 = vmatpush1.bf16.msra.mxu1 %v3303_v48  ;;  %v3365_v47 = vld [vmem:[#allocation10 + $0x584] ss:$28 sps:$4 sm:$0xff]   ;;  %v3360_v48 = vld [vmem:[#allocation10 + $0x578] ss:$28 sps:$4 sm:$0xff]  }
 0x259   :  { %2305 = vmatprep.subr.bf16.mxu0 %v3308_v49  ;;  %2387 = vmatprep.subr.bf16.mxu1 %v3311_v50  ;;  %v3363_v49 = vld [vmem:[#allocation10 + $0x580] ss:$28 sps:$4 sm:$0xff]   ;;  %v3368_v50 = vld [vmem:[#allocation10 + $0x5b4] ss:$28 sps:$4 sm:$0xff]  }
 0x2ee   :  { %v763_v56 = vpop.f32.mrb[0].mxu0  ;;  %v3861_v57 = vpop.f32.mrb[8].mxu1 }
 0x2ef   :  { %v764_v58 = vadd.f32 %v763_v56, %v392_v53  ;;  %v765_v59 = vpop.f32.mrb[1].mxu0  ;;  %v806_v60 = vpop.f32.mrb[9].mxu1  ;;  %v3371_v53 = vld [vmem:[#allocation10 + $0x5bc] ss:$28 sps:$4 sm:$0xff]   ;;  %v3374_v56 = vld [vmem:[#allocation10 + $0x5ec] ss:$28 sps:$4 sm:$0xff]  }
 0x2f0   :  { %v766_v61 = vadd.f32 %v765_v59, %v396_v54  ;;  %v807_v62 = vadd.f32 %v806_v60, %v404_v55  ;;  %v767_v63 = vpop.f32.mrb[2].mxu0  ;;  %v808_v0 = vpop.f32.mrb[10].mxu1  ;;  %v3366_v54 = vld [vmem:[#allocation10 + $0x5b0] ss:$28 sps:$4 sm:$0xff]   ;;  %v3369_v55 = vld [vmem:[#allocation10 + $0x5b8] ss:$28 sps:$4 sm:$0xff]  }
 0x2f1   :  { %v811_v1 = vmax.f32 %v764_v58, 0.0  ;;  %v768_v2 = vpop.f32.mrb[3].mxu0  ;;  %v809_v3 = vpop.f32.mrb[11].mxu1  ;;  %v3377_v58 = vld [vmem:[#allocation10 + $0x5f4] ss:$28 sps:$4 sm:$0xff]  }
 0x2f2   :  { %v812_v4 = vmax.f32 %v766_v61, 0.0  ;;  %v814_v5 = vmax.f32 %v807_v62, 0.0  ;;  %v3372_v59 = vld [vmem:[#allocation10 + $0x5e8] ss:$28 sps:$4 sm:$0xff]   ;;  %v3375_v60 = vld [vmem:[#allocation10 + $0x5f0] ss:$28 sps:$4 sm:$0xff]  }
 0x2f3   :  { %v3865_v9 = vpack.c.bf16 %v811_v1, %v811_v1  ;;  %v3380_v61 = vld [vmem:[#allocation10 + $0x624] ss:$28 sps:$4 sm:$0xff]   ;;  %v3383_v62 = vld [vmem:[#allocation10 + $0x62c] ss:$28 sps:$4 sm:$0xff]   ;;  %v399_v1 = vsub.s32 2, %v3835_v32 }
 0x2f4   :  { %v3863_v6 = vpack.c.bf16 %v812_v4, %v812_v4  ;;  %v3869_v12 = vpack.c.bf16 %v814_v5, %v814_v5  ;;  %v3378_v63 = vld [vmem:[#allocation10 + $0x620] ss:$28 sps:$4 sm:$0xff]   ;;  %v3381_v0 = vld [vmem:[#allocation10 + $0x628] ss:$28 sps:$4 sm:$0xff]   ;;  %v3384_v4 = vld [vmem:[#allocation10 + $0x658] ss:$28 sps:$4 sm:$0xff]  }
 0x2f5   :  { %v3386_v2 = vld [vmem:[#allocation10 + $0x65c] ss:$28 sps:$4 sm:$0xff]   ;;  %v3389_v3 = vld [vmem:[#allocation10 + $0x664] ss:$28 sps:$4 sm:$0xff]  }
 0x2f6   :  { %2296 = vmatprep.mubr.bf16.mxu0 %v3863_v6  ;;  %2378 = vmatprep.mubr.bf16.mxu1 %v3863_v6  ;;  %v3387_v5 = vld [vmem:[#allocation10 + $0x660] ss:$28 sps:$4 sm:$0xff]  }
 0x2f7   :  { %2297 = vmatmul.mubr.bf16.vlgmr.msra.gmra.mrb[4].mxu0 %v3865_v9  ;;  %2379 = vmatmul.mubr.bf16.vlgmr.msra.gmra.mrb[12].mxu1 %v3865_v9 }
 0x2f8   :  { %2306 = vmatpush1.bf16.msra.mxu0 %v3306_v7  ;;  %2388 = vmatpush1.bf16.msra.mxu1 %v3309_v8  ;;  %v400_v7 = vrot.slane %v3851_v51, %v399_v1  ;;  %v3392_v8 = vld [vmem:[#allocation10 + $0x694] ss:$28 sps:$4 sm:$0xff]  }
 0x2f9   :  { %2337 = vmatprep.mubr.bf16.mxu0 %v3869_v12  ;;  %2419 = vmatprep.mubr.bf16.mxu1 %v3869_v12  ;;  %v3404_v51 = vld [vmem:[#allocation10 + $0x14] ss:$28 sps:$4 sm:$0xff]  }
 0x2fa   :  { %2307 = vmatprep.subr.bf16.mxu0 %v3314_v10  ;;  %2389 = vmatprep.subr.bf16.mxu1 %v3317_v11  ;;  %v3395_v10 = vld [vmem:[#allocation10 + $0x69c] ss:$28 sps:$4 sm:$0xff]   ;;  %v3390_v11 = vld [vmem:[#allocation10 + $0x690] ss:$28 sps:$4 sm:$0xff]  }
 0x2fc   :  { %2308 = vmatpush1.bf16.msra.mxu0 %v3312_v13  ;;  %2390 = vmatpush1.bf16.msra.mxu1 %v3315_v14  ;;  %v3393_v13 = vld [vmem:[#allocation10 + $0x698] ss:$28 sps:$4 sm:$0xff]   ;;  %v805_v14 = vadd.f32 %v3861_v57, %v400_v7  ;;  %v3460_v7 = vld [vmem:[#allocation10 + $0x600] ss:$28 sps:$4 sm:$0xff]  }
 0x2fd   :  { %2309 = vmatprep.subr.bf16.mxu0 %v3320_v15  ;;  %2391 = vmatprep.subr.bf16.mxu1 %v3323_v16  ;;  %v3398_v15 = vld [vmem:[#allocation10 + $0x6cc] ss:$28 sps:$4 sm:$0xff]   ;;  %v3401_v16 = vld [vmem:[#allocation10 + $0x6d4] ss:$28 sps:$4 sm:$0xff]  }
 0x2fe   :  { %v3406_v57 = vld [vmem:[#allocation10 + $0x18] ss:$28 sps:$4 sm:$0xff]  }
 0x300   :  { %2310 = vmatpush1.bf16.msra.mxu0 %v3318_v17  ;;  %2392 = vmatpush1.bf16.msra.mxu1 %v3321_v18  ;;  %v3396_v17 = vld [vmem:[#allocation10 + $0x6c8] ss:$28 sps:$4 sm:$0xff]   ;;  %v3399_v18 = vld [vmem:[#allocation10 + $0x6d0] ss:$28 sps:$4 sm:$0xff]  }
 0x301   :  { %2311 = vmatprep.subr.bf16.mxu0 %v3326_v19  ;;  %2393 = vmatprep.subr.bf16.mxu1 %v3329_v20  ;;  %v813_v19 = vmax.f32 %v805_v14, 0.0  ;;  %v3405_v20 = vld [vmem:[#allocation10 + $0x1d8] ss:$28 sps:$4 sm:$0xff]   ;;  %v3462_v14 = vld [vmem:[#allocation10 + $0x2b0] ss:$28 sps:$4 sm:$0xff]  }
 0x304   :  { %2312 = vmatpush1.bf16.msra.mxu0 %v3324_v21  ;;  %2394 = vmatpush1.bf16.msra.mxu1 %v3327_v22  ;;  %v3402_v21 = vld [vmem:[#allocation10 + $0x10] ss:$28 sps:$4 sm:$0xff]   ;;  %v3880_v22 = vpack.c.bf16 %v813_v19, %v813_v19 }
 0x305   :  { %2313 = vmatprep.subr.bf16.mxu0 %v3332_v23  ;;  %2395 = vmatprep.subr.bf16.mxu1 %v3335_v24  ;;  %v3409_v23 = vld [vmem:[#allocation10 + $0x4c] ss:$28 sps:$4 sm:$0xff]  }
 0x306   :  { %v3410_v24 = vld [vmem:[#allocation10 + $0x210] ss:$28 sps:$4 sm:$0xff]  }
 0x307   :  { %v3471_v19 = vld [vmem:[#allocation10 + $0x4b0] ss:$28 sps:$4 sm:$0xff]  }
 0x308   :  { %2314 = vmatpush1.bf16.msra.mxu0 %v3330_v25  ;;  %2396 = vmatpush1.bf16.msra.mxu1 %v3333_v26  ;;  %v3407_v25 = vld [vmem:[#allocation10 + $0x48] ss:$28 sps:$4 sm:$0xff]   ;;  %v3411_v26 = vld [vmem:[#allocation10 + $0x50] ss:$28 sps:$4 sm:$0xff]  }
 0x309   :  { %2315 = vmatprep.subr.bf16.mxu0 %v3338_v27  ;;  %2397 = vmatprep.subr.bf16.mxu1 %v3341_v28  ;;  %v3414_v27 = vld [vmem:[#allocation10 + $0x84] ss:$28 sps:$4 sm:$0xff]  }
 0x30a   :  { %v3415_v28 = vld [vmem:[#allocation10 + $0x248] ss:$28 sps:$4 sm:$0xff]  }
 0x30c   :  { %2316 = vmatpush1.bf16.msra.mxu0 %v3336_v29  ;;  %2398 = vmatpush1.bf16.msra.mxu1 %v3339_v30  ;;  %v3412_v29 = vld [vmem:[#allocation10 + $0x80] ss:$28 sps:$4 sm:$0xff]   ;;  %v3416_v30 = vld [vmem:[#allocation10 + $0x88] ss:$28 sps:$4 sm:$0xff]  }
 0x30d   :  { %2317 = vmatprep.subr.bf16.mxu0 %v3344_v31  ;;  %2399 = vmatprep.subr.bf16.mxu1 %v3347_v34  ;;  %v3419_v31 = vld [vmem:[#allocation10 + $0xbc] ss:$28 sps:$4 sm:$0xff]  }
 0x30e   :  { %v3420_v34 = vld [vmem:[#allocation10 + $0x280] ss:$28 sps:$4 sm:$0xff]  }
 0x310   :  { %2318 = vmatpush1.bf16.msra.mxu0 %v3342_v36  ;;  %2400 = vmatpush1.bf16.msra.mxu1 %v3345_v37  ;;  %v3417_v36 = vld [vmem:[#allocation10 + $0xb8] ss:$28 sps:$4 sm:$0xff]   ;;  %v3421_v37 = vld [vmem:[#allocation10 + $0xc0] ss:$28 sps:$4 sm:$0xff]  }
 0x311   :  { %2319 = vmatprep.subr.bf16.mxu0 %v3350_v38  ;;  %2401 = vmatprep.subr.bf16.mxu1 %v3353_v39  ;;  %v3424_v38 = vld [vmem:[#allocation10 + $0xf4] ss:$28 sps:$4 sm:$0xff]  }
 0x312   :  { %v3422_v39 = vld [vmem:[#allocation10 + $0xf0] ss:$28 sps:$4 sm:$0xff]  }
 0x314   :  { %2320 = vmatpush1.bf16.msra.mxu0 %v3348_v40  ;;  %2402 = vmatpush1.bf16.msra.mxu1 %v3351_v41  ;;  %v3426_v40 = vld [vmem:[#allocation10 + $0xf8] ss:$28 sps:$4 sm:$0xff]   ;;  %v3429_v41 = vld [vmem:[#allocation10 + $0x12c] ss:$28 sps:$4 sm:$0xff]  }
 0x315   :  { %2321 = vmatprep.subr.bf16.mxu0 %v3356_v42  ;;  %2403 = vmatprep.subr.bf16.mxu1 %v3359_v43  ;;  %v3430_v42 = vld [vmem:[#allocation10 + $0x2f0] ss:$28 sps:$4 sm:$0xff]   ;;  %v3427_v43 = vld [vmem:[#allocation10 + $0x128] ss:$28 sps:$4 sm:$0xff]  }
 0x318   :  { %2322 = vmatpush1.bf16.msra.mxu0 %v3354_v44  ;;  %2404 = vmatpush1.bf16.msra.mxu1 %v3357_v45  ;;  %v3431_v44 = vld [vmem:[#allocation10 + $0x130] ss:$28 sps:$4 sm:$0xff]   ;;  %v3434_v45 = vld [vmem:[#allocation10 + $0x164] ss:$28 sps:$4 sm:$0xff]  }
 0x319   :  { %2323 = vmatprep.subr.bf16.mxu0 %v3362_v46  ;;  %2405 = vmatprep.subr.bf16.mxu1 %v3365_v47  ;;  %v3435_v46 = vld [vmem:[#allocation10 + $0x328] ss:$28 sps:$4 sm:$0xff]   ;;  %v3432_v47 = vld [vmem:[#allocation10 + $0x160] ss:$28 sps:$4 sm:$0xff]  }
 0x31c   :  { %2324 = vmatpush1.bf16.msra.mxu0 %v3360_v48  ;;  %2406 = vmatpush1.bf16.msra.mxu1 %v3363_v49  ;;  %v3436_v48 = vld [vmem:[#allocation10 + $0x168] ss:$28 sps:$4 sm:$0xff]   ;;  %v3439_v49 = vld [vmem:[#allocation10 + $0x19c] ss:$28 sps:$4 sm:$0xff]  }
 0x31d   :  { %2325 = vmatprep.subr.bf16.mxu0 %v3368_v50  ;;  %2407 = vmatprep.subr.bf16.mxu1 %v3371_v53  ;;  %v3440_v50 = vld [vmem:[#allocation10 + $0x360] ss:$28 sps:$4 sm:$0xff]   ;;  %v3437_v53 = vld [vmem:[#allocation10 + $0x198] ss:$28 sps:$4 sm:$0xff]  }
 0x320   :  { %2326 = vmatpush1.bf16.msra.mxu0 %v3366_v54  ;;  %2408 = vmatpush1.bf16.msra.mxu1 %v3369_v55  ;;  %v3441_v54 = vld [vmem:[#allocation10 + $0x1a0] ss:$28 sps:$4 sm:$0xff]   ;;  %v3444_v55 = vld [vmem:[#allocation10 + $0x1d4] ss:$28 sps:$4 sm:$0xff]  }
 0x321   :  { %2327 = vmatprep.subr.bf16.mxu0 %v3374_v56  ;;  %2409 = vmatprep.subr.bf16.mxu1 %v3377_v58  ;;  %v3445_v56 = vld [vmem:[#allocation10 + $0x558] ss:$28 sps:$4 sm:$0xff]   ;;  %v3442_v58 = vld [vmem:[#allocation10 + $0x1d0] ss:$28 sps:$4 sm:$0xff]  }
 0x324   :  { %2328 = vmatpush1.bf16.msra.mxu0 %v3372_v59  ;;  %2410 = vmatpush1.bf16.msra.mxu1 %v3375_v60  ;;  %v3446_v59 = vld [vmem:[#allocation10 + $0x398] ss:$28 sps:$4 sm:$0xff]   ;;  %v3449_v60 = vld [vmem:[#allocation10 + $0x20c] ss:$28 sps:$4 sm:$0xff]  }
 0x325   :  { %2329 = vmatprep.subr.bf16.mxu0 %v3380_v61  ;;  %2411 = vmatprep.subr.bf16.mxu1 %v3383_v62  ;;  %v3450_v61 = vld [vmem:[#allocation10 + $0x590] ss:$28 sps:$4 sm:$0xff]   ;;  %v3447_v62 = vld [vmem:[#allocation10 + $0x208] ss:$28 sps:$4 sm:$0xff]  }
 0x328   :  { %2330 = vmatpush1.bf16.msra.mxu0 %v3378_v63  ;;  %2412 = vmatpush1.bf16.msra.mxu1 %v3381_v0  ;;  %v3451_v63 = vld [vmem:[#allocation10 + $0x3d0] ss:$28 sps:$4 sm:$0xff]   ;;  %v3454_v0 = vld [vmem:[#allocation10 + $0x244] ss:$28 sps:$4 sm:$0xff]  }
 0x329   :  { %2331 = vmatprep.subr.bf16.mxu0 %v3386_v2  ;;  %2413 = vmatprep.subr.bf16.mxu1 %v3389_v3  ;;  %v3455_v2 = vld [vmem:[#allocation10 + $0x5c8] ss:$28 sps:$4 sm:$0xff]   ;;  %v3452_v3 = vld [vmem:[#allocation10 + $0x240] ss:$28 sps:$4 sm:$0xff]  }
 0x32c   :  { %2332 = vmatpush1.bf16.msra.mxu0 %v3384_v4  ;;  %2414 = vmatpush1.bf16.msra.mxu1 %v3387_v5  ;;  %v3456_v4 = vld [vmem:[#allocation10 + $0x408] ss:$28 sps:$4 sm:$0xff]   ;;  %v3459_v5 = vld [vmem:[#allocation10 + $0x27c] ss:$28 sps:$4 sm:$0xff]  }
 0x32d   :  { %2333 = vmatprep.subr.bf16.mxu0 %v3392_v8  ;;  %2415 = vmatprep.subr.bf16.mxu1 %v3395_v10  ;;  %v3457_v8 = vld [vmem:[#allocation10 + $0x278] ss:$28 sps:$4 sm:$0xff]   ;;  %v3461_v10 = vld [vmem:[#allocation10 + $0x440] ss:$28 sps:$4 sm:$0xff]  }
 0x330   :  { %2334 = vmatpush1.bf16.msra.mxu0 %v3390_v11  ;;  %2416 = vmatpush1.bf16.msra.mxu1 %v3393_v13  ;;  %v3464_v11 = vld [vmem:[#allocation10 + $0x2b4] ss:$28 sps:$4 sm:$0xff]  }
 0x331   :  { %2335 = vmatprep.subr.bf16.mxu0 %v3398_v15  ;;  %2417 = vmatprep.subr.bf16.mxu1 %v3401_v16  ;;  %v3465_v13 = vld [vmem:[#allocation10 + $0x638] ss:$28 sps:$4 sm:$0xff]   ;;  %v3469_v16 = vld [vmem:[#allocation10 + $0x2ec] ss:$28 sps:$4 sm:$0xff]  }
 0x332   :  { %v3466_v15 = vld [vmem:[#allocation10 + $0x478] ss:$28 sps:$4 sm:$0xff]  }
 0x334   :  { %2336 = vmatpush1.bf16.msra.mxu0 %v3396_v17  ;;  %2418 = vmatpush1.bf16.msra.mxu1 %v3399_v18  ;;  %v3470_v17 = vld [vmem:[#allocation10 + $0x670] ss:$28 sps:$4 sm:$0xff]   ;;  %v3467_v18 = vld [vmem:[#allocation10 + $0x2e8] ss:$28 sps:$4 sm:$0xff]  }
 0x335   :  { %2428 = vmatprep.subr.bf16.mxu0 %v3404_v51  ;;  %3001 = vmatprep.subr.bf16.mxu1 %v3405_v20  ;;  %v3474_v51 = vld [vmem:[#allocation10 + $0x324] ss:$28 sps:$4 sm:$0xff]  }
 0x336   :  { %v3475_v20 = vld [vmem:[#allocation10 + $0x6a8] ss:$28 sps:$4 sm:$0xff]  }
 0x337   :  { %2338 = vmatmul.mubr.bf16.vlgmr.msra.gmra.mrb[4].mxu0 %v3880_v22  ;;  %2420 = vmatmul.mubr.bf16.vlgmr.msra.gmra.mrb[12].mxu1 %v3880_v22 }
 0x338   :  { %2429 = vmatpush1.bf16.msra.mxu0 %v3402_v21  ;;  %2460 = vmatprep.mubr.bf16.mxu0 %v3863_v6  ;;  %v3472_v21 = vld [vmem:[#allocation10 + $0x320] ss:$28 sps:$4 sm:$0xff]  }
 0x339   :  { %3002 = vmatpush3.bf16.msra.mxu1 %v3406_v57  ;;  %2542 = vmatprep.mubr.bf16.mxu1 %v3863_v6  ;;  %v3425_v6 = vld [vmem:[#allocation10 + $0x2b8] ss:$28 sps:$4 sm:$0xff]   ;;  %v3476_v57 = vld [vmem:[#allocation10 + $0x4e8] ss:$28 sps:$4 sm:$0xff]  }
 0x33a   :  { %2430 = vmatprep.subr.bf16.mxu0 %v3409_v23  ;;  %3003 = vmatprep.subr.bf16.mxu1 %v3410_v24  ;;  %v3479_v23 = vld [vmem:[#allocation10 + $0x35c] ss:$28 sps:$4 sm:$0xff]  }
 0x33b   :  { %v3480_v24 = vld [vmem:[#allocation10 + $0x6e0] ss:$28 sps:$4 sm:$0xff]  }
 0x33c   :  { %2431 = vmatpush1.bf16.msra.mxu0 %v3407_v25  ;;  %v3477_v25 = vld [vmem:[#allocation10 + $0x358] ss:$28 sps:$4 sm:$0xff]  }
 0x33d   :  { %3004 = vmatpush3.bf16.msra.mxu1 %v3411_v26  ;;  %2432 = vmatprep.subr.bf16.mxu0 %v3414_v27  ;;  %v3481_v26 = vld [vmem:[#allocation10 + $0x520] ss:$28 sps:$4 sm:$0xff]   ;;  %v3484_v27 = vld [vmem:[#allocation10 + $0x394] ss:$28 sps:$4 sm:$0xff]  }
 0x33e   :  { %3005 = vmatprep.subr.bf16.mxu1 %v3415_v28  ;;  %v3482_v28 = vld [vmem:[#allocation10 + $0x390] ss:$28 sps:$4 sm:$0xff]  }
 0x340   :  { %2433 = vmatpush1.bf16.msra.mxu0 %v3412_v29  ;;  %v3487_v29 = vld [vmem:[#allocation10 + $0x3cc] ss:$28 sps:$4 sm:$0xff]  }
 0x341   :  { %3006 = vmatpush3.bf16.msra.mxu1 %v3416_v30  ;;  %2434 = vmatprep.subr.bf16.mxu0 %v3419_v31  ;;  %v3485_v30 = vld [vmem:[#allocation10 + $0x3c8] ss:$28 sps:$4 sm:$0xff]  }
 0x342   :  { %3007 = vmatprep.subr.bf16.mxu1 %v3420_v34  ;;  %v3490_v31 = vld [vmem:[#allocation10 + $0x404] ss:$28 sps:$4 sm:$0xff]  }
 0x343   :  { %v3488_v34 = vld [vmem:[#allocation10 + $0x400] ss:$28 sps:$4 sm:$0xff]  }
 0x344   :  { %2435 = vmatpush1.bf16.msra.mxu0 %v3417_v36  ;;  %v3493_v36 = vld [vmem:[#allocation10 + $0x43c] ss:$28 sps:$4 sm:$0xff]  }
 0x345   :  { %3008 = vmatpush3.bf16.msra.mxu1 %v3421_v37  ;;  %2436 = vmatprep.subr.bf16.mxu0 %v3424_v38  ;;  %v3491_v37 = vld [vmem:[#allocation10 + $0x438] ss:$28 sps:$4 sm:$0xff]  }
 0x346   :  { %3009 = vmatprep.subr.bf16.mxu1 %v3425_v6  ;;  %v3496_v38 = vld [vmem:[#allocation10 + $0x474] ss:$28 sps:$4 sm:$0xff]  }
 0x347   :  { %v3494_v6 = vld [vmem:[#allocation10 + $0x470] ss:$28 sps:$4 sm:$0xff]  }
 0x348   :  { %2437 = vmatpush1.bf16.msra.mxu0 %v3422_v39  ;;  %v3497_v39 = vld [vmem:[#allocation10 + $0x4a8] ss:$28 sps:$4 sm:$0xff]  }
 0x349   :  { %3010 = vmatpush3.bf16.msra.mxu1 %v3426_v40  ;;  %2438 = vmatprep.subr.bf16.mxu0 %v3429_v41  ;;  %v3502_v40 = vld [vmem:[#allocation10 + $0x4e4] ss:$28 sps:$4 sm:$0xff]   ;;  %v3505_v41 = vld [vmem:[#allocation10 + $0x51c] ss:$28 sps:$4 sm:$0xff]  }
 0x34a   :  { %3011 = vmatprep.subr.bf16.mxu1 %v3430_v42  ;;  %v3503_v42 = vld [vmem:[#allocation10 + $0x518] ss:$28 sps:$4 sm:$0xff]  }
 0x34c   :  { %2439 = vmatpush1.bf16.msra.mxu0 %v3427_v43  ;;  %v3508_v43 = vld [vmem:[#allocation10 + $0x554] ss:$28 sps:$4 sm:$0xff]  }
 0x34d   :  { %3012 = vmatpush3.bf16.msra.mxu1 %v3431_v44  ;;  %2440 = vmatprep.subr.bf16.mxu0 %v3434_v45  ;;  %v3506_v44 = vld [vmem:[#allocation10 + $0x550] ss:$28 sps:$4 sm:$0xff]  }
 0x34e   :  { %3013 = vmatprep.subr.bf16.mxu1 %v3435_v46  ;;  %v3511_v45 = vld [vmem:[#allocation10 + $0x58c] ss:$28 sps:$4 sm:$0xff]  }
 0x34f   :  { %v3509_v46 = vld [vmem:[#allocation10 + $0x588] ss:$28 sps:$4 sm:$0xff]  }
 0x350   :  { %2441 = vmatpush1.bf16.msra.mxu0 %v3432_v47  ;;  %v3514_v47 = vld [vmem:[#allocation10 + $0x5c4] ss:$28 sps:$4 sm:$0xff]  }
 0x351   :  { %3014 = vmatpush3.bf16.msra.mxu1 %v3436_v48  ;;  %2442 = vmatprep.subr.bf16.mxu0 %v3439_v49  ;;  %v3512_v48 = vld [vmem:[#allocation10 + $0x5c0] ss:$28 sps:$4 sm:$0xff]  }
 0x352   :  { %3015 = vmatprep.subr.bf16.mxu1 %v3440_v50  ;;  %v3517_v49 = vld [vmem:[#allocation10 + $0x5fc] ss:$28 sps:$4 sm:$0xff]  }
 0x353   :  { %v3515_v50 = vld [vmem:[#allocation10 + $0x5f8] ss:$28 sps:$4 sm:$0xff]  }
 0x354   :  { %2443 = vmatpush1.bf16.msra.mxu0 %v3437_v53  ;;  %v3520_v53 = vld [vmem:[#allocation10 + $0x634] ss:$28 sps:$4 sm:$0xff]  }
 0x355   :  { %3016 = vmatpush3.bf16.msra.mxu1 %v3441_v54  ;;  %2444 = vmatprep.subr.bf16.mxu0 %v3444_v55  ;;  %v3518_v54 = vld [vmem:[#allocation10 + $0x630] ss:$28 sps:$4 sm:$0xff]  }
 0x356   :  { %3023 = vmatprep.subr.bf16.mxu1 %v3445_v56  ;;  %v3523_v55 = vld [vmem:[#allocation10 + $0x66c] ss:$28 sps:$4 sm:$0xff]  }
 0x357   :  { %v3521_v56 = vld [vmem:[#allocation10 + $0x668] ss:$28 sps:$4 sm:$0xff]  }
 0x358   :  { %2543 = vmatmul.mubr.bf16.vlgmr.msra.gmra.mrb[16].mxu1 %v3865_v9  ;;  %2445 = vmatpush1.bf16.msra.mxu0 %v3442_v58  ;;  %v3526_v58 = vld [vmem:[#allocation10 + $0x6a4] ss:$28 sps:$4 sm:$0xff]  }
 0x359   :  { %3024 = vmatpush3.bf16.msra.mxu1 %v3446_v59  ;;  %2582 = vmatprep.mubr.bf16.mxu1 %v3869_v12  ;;  %v3524_v59 = vld [vmem:[#allocation10 + $0x6a0] ss:$28 sps:$4 sm:$0xff]  }
 0x35a   :  { %2446 = vmatprep.subr.bf16.mxu0 %v3449_v60  ;;  %3025 = vmatprep.subr.bf16.mxu1 %v3450_v61  ;;  %v3529_v60 = vld [vmem:[#allocation10 + $0x6dc] ss:$28 sps:$4 sm:$0xff]  }
 0x35b   :  { %v3527_v61 = vld [vmem:[#allocation10 + $0x6d8] ss:$28 sps:$4 sm:$0xff]  }
 0x35c   :  { %2447 = vmatpush1.bf16.msra.mxu0 %v3447_v62  ;;  %v3895_v62 = vld [vmem:[%s3933_s8] sm:$0xff]  ;;  %s3714_s8 = smov [#allocation11]  }
 0x35d   :  { %3026 = vmatpush3.bf16.msra.mxu1 %v3451_v63  ;;  %2448 = vmatprep.subr.bf16.mxu0 %v3454_v0  ;;  %v1080_v63 = vrot.slane %v3895_v62, %v3838_v33  ;;  %v1088_v0 = vrot.slane %v3895_v62, %v399_v1  ;;  %s2671_s1 = sshll.u32 %s3714_s8, 4  ;;  %s2672_s1 = int_to_ptr.vmem [resolvable:$true] %s2671_s1 }
 0x35e   :  { %3027 = vmatprep.subr.bf16.mxu1 %v3455_v2  ;;  %v1084_v2 = vrot.slane %v3895_v62, %v3844_v35  ;;  %s3668_s10 = scalar_lea.vmem %s2672_s1, 448  ;;  %p3673_p13 = scmp.lt.s32.totalorder %s2672_s1, %s2672_s1 }
 0x35f   :  { %p3669_p12 = scmp.ne.s32.totalorder %s2672_s1, %s3668_s10  ;;  %p3674_p0 = scmp.lt.s32.totalorder %s3668_s10, %s3668_s10 }
 0x360   :  { %2449 = vmatpush1.bf16.msra.mxu0 %v3452_v3  ;;  %v1092_v3 = vrot.slane %v3895_v62, %v403_v52 }
 0x361   :  { %3028 = vmatpush3.bf16.msra.mxu1 %v3456_v4  ;;  %2450 = vmatprep.subr.bf16.mxu0 %v3459_v5  ;;  %p3675_p1 = por %p3674_p0, %p3673_p13 }
 0x362   :  { %3029 = vmatprep.subr.bf16.mxu1 %v3460_v7 }
 0x363   :  { %p3676_p2 = pnand %p3675_p1, %p3669_p12 }
 0x364   :  { %2451 = vmatpush1.bf16.msra.mxu0 %v3457_v8 }
 0x365   :  { %3030 = vmatpush3.bf16.msra.mxu1 %v3461_v10  ;;  %2452 = vmatprep.subr.bf16.mxu0 %v3464_v11 }
 0x366   :  { %3031 = vmatprep.subr.bf16.mxu1 %v3465_v13 }
 0x368   :  { %2453 = vmatpush1.bf16.msra.mxu0 %v3462_v14 }
 0x369   :  { %3032 = vmatpush3.bf16.msra.mxu1 %v3466_v15  ;;  %2454 = vmatprep.subr.bf16.mxu0 %v3469_v16 }
 0x36a   :  { %3033 = vmatprep.subr.bf16.mxu1 %v3470_v17 }
 0x36c   :  { %2455 = vmatpush1.bf16.msra.mxu0 %v3467_v18 }
 0x36d   :  { %3034 = vmatpush3.bf16.msra.mxu1 %v3471_v19  ;;  %2456 = vmatprep.subr.bf16.mxu0 %v3474_v51 }
 0x36e   :  { %3035 = vmatprep.subr.bf16.mxu1 %v3475_v20 }
 0x370   :  { %2457 = vmatpush1.bf16.msra.mxu0 %v3472_v21 }
 0x371   :  { %3036 = vmatpush3.bf16.msra.mxu1 %v3476_v57  ;;  %2458 = vmatprep.subr.bf16.mxu0 %v3479_v23 }
 0x372   :  { %3037 = vmatprep.subr.bf16.mxu1 %v3480_v24 }
 0x374   :  { %2459 = vmatpush1.bf16.msra.mxu0 %v3477_v25 }
 0x375   :  { %3038 = vmatpush3.bf16.msra.mxu1 %v3481_v26  ;;  %2469 = vmatprep.subr.bf16.mxu0 %v3484_v27 }
 0x377   :  { %2461 = vmatmul.mubr.bf16.vlgmr.msra.gmra.mrb[8].mxu0 %v3865_v9  ;;  %v3499_v9 = vld [vmem:[#allocation10 + $0x4ac] ss:$28 sps:$4 sm:$0xff]  }
 0x378   :  { %2583 = vmatmul.mubr.bf16.vlgmr.msra.gmra.mrb[20].mxu1 %v3880_v22  ;;  %2470 = vmatpush1.bf16.msra.mxu0 %v3482_v28 }
 0x379   :  { %2501 = vmatprep.mubr.bf16.mxu0 %v3869_v12  ;;  %2471 = vmatprep.subr.bf16.mxu0 %v3487_v29  ;;  %v3500_v12 = vld [vmem:[#allocation10 + $0x4e0] ss:$28 sps:$4 sm:$0xff]  }
 0x37c   :  { %2472 = vmatpush1.bf16.msra.mxu0 %v3485_v30 }
 0x37d   :  { %2473 = vmatprep.subr.bf16.mxu0 %v3490_v31 }
 0x380   :  { %2474 = vmatpush1.bf16.msra.mxu0 %v3488_v34 }
 0x381   :  { %2475 = vmatprep.subr.bf16.mxu0 %v3493_v36 }
 0x384   :  { %2476 = vmatpush1.bf16.msra.mxu0 %v3491_v37 }
 0x385   :  { %2477 = vmatprep.subr.bf16.mxu0 %v3496_v38 }
 0x388   :  { %2478 = vmatpush1.bf16.msra.mxu0 %v3494_v6 }
 0x389   :  { %2479 = vmatprep.subr.bf16.mxu0 %v3499_v9 }
 0x38c   :  { %2480 = vmatpush1.bf16.msra.mxu0 %v3497_v39 }
 0x38d   :  { %2481 = vmatprep.subr.bf16.mxu0 %v3502_v40 }
 0x390   :  { %2482 = vmatpush1.bf16.msra.mxu0 %v3500_v12 }
 0x391   :  { %2483 = vmatprep.subr.bf16.mxu0 %v3505_v41 }
 0x394   :  { %2484 = vmatpush1.bf16.msra.mxu0 %v3503_v42 }
 0x395   :  { %2485 = vmatprep.subr.bf16.mxu0 %v3508_v43 }
 0x398   :  { %2486 = vmatpush1.bf16.msra.mxu0 %v3506_v44  ;;  %v1103_v44 = vsub.s32 6, %v3835_v32 }
 0x399   :  { %2487 = vmatprep.subr.bf16.mxu0 %v3511_v45 }
 0x39a   :  { %v1104_v45 = vrot.slane %v3895_v62, %v1103_v44 }
 0x39c   :  { %2488 = vmatpush1.bf16.msra.mxu0 %v3509_v46 }
 0x39d   :  { %2489 = vmatprep.subr.bf16.mxu0 %v3514_v47 }
 0x3a0   :  { %2490 = vmatpush1.bf16.msra.mxu0 %v3512_v48 }
 0x3a1   :  { %2491 = vmatprep.subr.bf16.mxu0 %v3517_v49 }
 0x3a4   :  { %2492 = vmatpush1.bf16.msra.mxu0 %v3515_v50 }
 0x3a5   :  { %2493 = vmatprep.subr.bf16.mxu0 %v3520_v53 }
 0x3a8   :  { %2494 = vmatpush1.bf16.msra.mxu0 %v3518_v54 }
 0x3a9   :  { %2495 = vmatprep.subr.bf16.mxu0 %v3523_v55 }
 0x3ac   :  { %2496 = vmatpush1.bf16.msra.mxu0 %v3521_v56 }
 0x3ad   :  { %2497 = vmatprep.subr.bf16.mxu0 %v3526_v58 }
 0x3b0   :  { %2498 = vmatpush1.bf16.msra.mxu0 %v3524_v59 }
 0x3b1   :  { %2499 = vmatprep.subr.bf16.mxu0 %v3529_v60 }
 0x3b4   :  { %2500 = vmatpush1.bf16.msra.mxu0 %v3527_v61 }
 0x3b7   :  { %2502 = vmatmul.mubr.bf16.vlgmr.msra.gmra.mrb[8].mxu0 %v3880_v22 }
 0x40a   :  { %v2339_v22 = vpop.f32.mrb[4].mxu0  ;;  %v2421_v4 = vpop.f32.mrb[12].mxu1 }
 0x40b   :  { %v3053_v5 = vadd.f32 %v2339_v22, %v1080_v63  ;;  %v3055_v7 = vadd.f32 %v2421_v4, %v1088_v0  ;;  %v2341_v8 = vpop.f32.mrb[5].mxu0  ;;  %v2423_v10 = vpop.f32.mrb[13].mxu1  ;;  %v1095_v0 = vsub.s32 4, %v3835_v32 }
 0x40c   :  { %v3054_v11 = vadd.f32 %v2341_v8, %v1084_v2  ;;  %v3056_v13 = vadd.f32 %v2423_v10, %v1092_v3  ;;  %v2343_v33 = vpop.f32.mrb[6].mxu0  ;;  %v2425_v14 = vpop.f32.mrb[14].mxu1  ;;  %v1099_v2 = vsub.s32 5, %v3835_v32 }
 0x40d   :  { %v2590_v15 = vmax.f32 %v3053_v5, -30.0  ;;  %v2592_v16 = vmax.f32 %v3055_v7, -30.0  ;;  %v2344_v1 = vpop.f32.mrb[7].mxu0  ;;  %v2426_v17 = vpop.f32.mrb[15].mxu1  ;;  %v1096_v3 = vrot.slane %v3895_v62, %v1095_v0 }
 0x40e   :  { %v2591_v18 = vmax.f32 %v3054_v11, -30.0  ;;  %v2593_v35 = vmax.f32 %v3056_v13, -30.0  ;;  %v1100_v22 = vrot.slane %v3895_v62, %v1099_v2 }
 0x40f   :  { %v2597_v19 = vsub.f32 0.0, %v2590_v15  ;;  %v2599_v51 = vsub.f32 0.0, %v2592_v16 }
 0x410   :  { %v2598_v20 = vsub.f32 0.0, %v2591_v18  ;;  %v2600_v52 = vsub.f32 0.0, %v2593_v35 }
 0x411   :  { %v2604_v21 = vmul.f32 1.442695, %v2597_v19  ;;  %v2608_v57 = vmul.f32 1.442695, %v2599_v51 }
 0x412   :  { %v2606_v23 = vmul.f32 1.442695, %v2598_v20  ;;  %v2610_v24 = vmul.f32 1.442695, %v2600_v52 }
 0x413   :  { %3530 = vpow2.f32 %v2604_v21 }
 0x414   :  { %3532 = vpow2.f32 %v2608_v57 }
 0x415   :  { %3534 = vpow2.f32 %v2606_v23 }
 0x416   :  { %3536 = vpow2.f32 %v2610_v24 }
 0x41d   :  { %v3531_v25 = vpop.eup %3530 }
 0x41e   :  { %v3533_v26 = vpop.eup %3532  ;;  %v2618_v27 = vadd.f32 1.0, %v3531_v25 }
 0x41f   :  { %v3535_v28 = vpop.eup %3534  ;;  %v2620_v29 = vadd.f32 1.0, %v3533_v26 }
 0x420   :  { %v3537_v30 = vpop.eup %3536  ;;  %3538 = vrcp.f32 %v2618_v27  ;;  %v2619_v31 = vadd.f32 1.0, %v3535_v28 }
 0x421   :  { %3540 = vrcp.f32 %v2620_v29  ;;  %v2621_v34 = vadd.f32 1.0, %v3537_v30 }
 0x422   :  { %3542 = vrcp.f32 %v2619_v31 }
 0x423   :  { %3544 = vrcp.f32 %v2621_v34 }
 0x42a   :  { %v3539_v36 = vpop.eup %3538 }
 0x42b   :  { %v3541_v37 = vpop.eup %3540  ;;  %v3017_v38 = vpop.f32.mrb[16].mxu1 }
 0x42c   :  { %v3543_v6 = vpop.eup %3542  ;;  %v3018_v9 = vpop.f32.mrb[17].mxu1 }
 0x42d   :  { %v3545_v39 = vpop.eup %3544  ;;  %v3019_v40 = vadd.f32 %v3018_v9, %v3017_v38  ;;  %v3020_v12 = vpop.f32.mrb[18].mxu1  ;;  %v2994_v41 = vpack.c.bf16 %v3543_v6, %v3539_v36 }
 0x42e   :  { %v3021_v42 = vpop.f32.mrb[19].mxu1  ;;  %v2995_v43 = vpack.c.bf16 %v3545_v39, %v3541_v37 }
 0x42f   :  { %2661 = vst [vmem:[#allocation11] sm:$0xff] %v2994_v41  ;;  %v2545_v48 = vadd.f32 %v3019_v40, %v1104_v45 }
 0x430   :  { %2662 = vst [vmem:[#allocation11 + $0x8] sm:$0xff] %v2995_v43 }
 0x44b   :  { %v3039_v46 = vpop.f32.mrb[20].mxu1 }
 0x44c   :  { %v3040_v47 = vpop.f32.mrb[21].mxu1 }
 0x44d   :  { %v3041_v49 = vadd.f32 %v3040_v47, %v3039_v46  ;;  %v3042_v50 = vpop.f32.mrb[22].mxu1 }
 0x44e   :  { %v3043_v53 = vpop.f32.mrb[23].mxu1 }
 0x44f   :  { %v2585_v54 = vadd.f32 %v3041_v49, %v2545_v48 }
 0x451   :  { %v2596_v55 = vmax.f32 %v2585_v54, -30.0 }
 0x453   :  { %v2603_v56 = vsub.f32 0.0, %v2596_v55 }
 0x455   :  { %v2616_v58 = vmul.f32 1.442695, %v2603_v56 }
 0x457   :  { %3546 = vpow2.f32 %v2616_v58 }
 0x461   :  { %v3547_v59 = vpop.eup %3546 }
 0x462   :  { %v2624_v60 = vadd.f32 1.0, %v3547_v59 }
 0x464   :  { %3548 = vrcp.f32 %v2624_v60 }
 0x46e   :  { %v3549_v61 = vpop.eup %3548 }
 0x46f   :  { %v2997_v63 = vpack.c.bf16 %v3549_v61, %v3549_v61 }
 0x471   :  { %2664 = vst [vmem:[#allocation11 + $0x18] sm:$0xf] %v2997_v63 }
 0x48a   :  { %v2503_v4 = vpop.f32.mrb[8].mxu0 }
 0x48b   :  { %v3057_v5 = vadd.f32 %v2503_v4, %v1096_v3  ;;  %v2505_v7 = vpop.f32.mrb[9].mxu0 }
 0x48c   :  { %v3058_v8 = vadd.f32 %v2505_v7, %v1100_v22  ;;  %v2507_v10 = vpop.f32.mrb[10].mxu0 }
 0x48d   :  { %v2594_v11 = vmax.f32 %v3057_v5, -30.0  ;;  %v2508_v13 = vpop.f32.mrb[11].mxu0 }
 0x48e   :  { %v2595_v33 = vmax.f32 %v3058_v8, -30.0 }
 0x48f   :  { %v2601_v14 = vsub.f32 0.0, %v2594_v11 }
 0x490   :  { %v2602_v15 = vsub.f32 0.0, %v2595_v33 }
 0x491   :  { %v2612_v16 = vmul.f32 1.442695, %v2601_v14 }
 0x492   :  { %v2614_v1 = vmul.f32 1.442695, %v2602_v15 }
 0x493   :  { %3550 = vpow2.f32 %v2612_v16 }
 0x494   :  { %3552 = vpow2.f32 %v2614_v1 }
 0x49d   :  { %v3551_v17 = vpop.eup %3550 }
 0x49e   :  { %v3553_v32 = vpop.eup %3552  ;;  %v2622_v18 = vadd.f32 1.0, %v3551_v17 }
 0x49f   :  { %v2623_v35 = vadd.f32 1.0, %v3553_v32 }
 0x4a0   :  { %3554 = vrcp.f32 %v2622_v18 }
 0x4a1   :  { %3556 = vrcp.f32 %v2623_v35 }
 0x4aa   :  { %v3555_v62 = vpop.eup %3554 }
 0x4ab   :  { %v3557_v19 = vpop.eup %3556 }
 0x4ac   :  { %v2996_v51 = vpack.c.bf16 %v3557_v19, %v3555_v62 }
 0x4ae   :  { %2663 = vst [vmem:[#allocation11 + $0x10] sm:$0xff] %v2996_v51 }
 0x4af   :  { %3679 = shalt.err (!%p3676_p2)
}
 0x4b0   :  { %s3680_s14 = scalar_lea.hbm %s3934_s9, 448 }
 0x4b1   :  { %p3681_p3 = scmp.ne.s32.totalorder %s3934_s9, %s3680_s14  ;;  %p3684_p4 = scmp.lt.u32.totalorder %s3680_s14, %s3934_s9 }
 0x4b3   :  { %p3686_p5 = pnand %p3684_p4, %p3681_p3 }
 0x4b5   :  { %3689 = shalt.err (!%p3686_p5)
}
 0x4b6   :  { %2674 = dma.vmem_to_hbm [thread:$0]  %s2672_s1, 448, %s3934_s9, [#allocation4]  }
 0x4b7   :  { %3696 = dma.done.wait [#allocation4], 448  }
 0x4b8   :  { %3697 = vsyncadd [#allocation4], 4294966848 }
 0x4b9   :  { %2678 = vsyncpa [#allocation3], 1 }
 0x4ba   :  { %2679 = vsyncpa [#allocation6], 1 }
 0x4bb   :  { %2680 = vsyncpa [#allocation9], 1 }
 0x4bc   :  { %2681 = vsyncpa [#allocation4], 1 }

</bundles_post_ra>
